<compile_context>
chip_gen: v5e
topology: v5e:2x2
jax: 0.10.0
libtpu: 0.0.40
codegen_flags: <defaults>
</compile_context>

<pallas_src>
import functools

import jax
import jax.numpy as jnp
from jax import lax
from jax.experimental import pallas as pl
from jax.experimental.pallas import tpu as pltpu

_LANE = 128      # lane width: last dim of h / W padded to a multiple of this
_SUBLANE = 16    # bf16 sublane packing: small N pads to a multiple of this
_NUM_POWERS = 4  # RK4 for a linear RHS uses operator powers 1..4


def _round_up(x: int, m: int) -> int:
    return (x + m - 1) // m * m


def _matrix_powers(m: jnp.ndarray, num_powers: int = _NUM_POWERS) -> jnp.ndarray:
    """Stack [m, m^2, ..., m^num_powers], computed in f32 at highest precision."""
    pows = [m]
    for _ in range(num_powers - 1):
        pows.append(jnp.dot(pows[-1], m, precision=lax.Precision.HIGHEST))
    return jnp.stack(pows)


def _ode_rk4_linear_kernel(a_pows_ref, w_pows_ref, h_ref, out_ref, *,
                           dt: float, num_steps: int):
    """Fixed-step RK4 for the linear ODE dh/dt = A h W, fully in VMEM.

    a_pows_ref: (4, N_p, N_p) bf16  -- A^1..A^4
    w_pows_ref: (4, GD, GD)  bf16   -- block-diag(W^k) for the G lane-stacked graphs
    h_ref/out_ref: (N_p, GD) f32    -- G graphs stacked along the lane dim
    """
    # For linear f, one RK4 step == 4th-order Taylor of exp(dt*L):
    #   h <- h + dt*Lh + dt^2/2*L^2h + dt^3/6*L^3h + dt^4/24*L^4h,  L^k h = A^k h W^k.
    coeffs = (dt, dt * dt / 2.0, dt ** 3 / 6.0, dt ** 4 / 24.0)

    def rk4_step(_, h):
        h_bf = h.astype(jnp.bfloat16)          # quantize matmul input once per step
        acc = h
        for k in range(_NUM_POWERS):           # static unroll: 4 independent chains
            ah = jnp.dot(a_pows_ref[k], h_bf,
                         preferred_element_type=jnp.float32)
            term = jnp.dot(ah.astype(jnp.bfloat16), w_pows_ref[k],
                           preferred_element_type=jnp.float32)
            acc = acc + coeffs[k] * term
        return acc

    h0 = h_ref[...].astype(jnp.float32)
    # Steps are strictly data-dependent: default (no) unroll per perf review.
    h_final = lax.fori_loop(0, num_steps, rk4_step, h0)
    out_ref[...] = h_final.astype(out_ref.dtype)


def ode_block_forward(adj, w, h, T: int = 1, num_steps: int = 32,
                      graphs_per_block=None):
    """Pallas equivalent of ODEBlock.forward(h, T): integrate 0 -> T, return h(T).

    h may be [N, D] (single graph) or [B, N, D] (batch sharing adj / W).
    `graphs_per_block` = graphs interleaved per grid step (lane-stacked).  On
    v7x with exactly 2 graphs, pass 1 so each TensorCore gets its own graph.
    """
    squeeze = h.ndim == 2
    if squeeze:
        h = h[None]
    B, N, D = h.shape
    assert adj.shape == (N, N)
    assert w.shape == (D, D)

    # --- padding policy: lane-dense D, but do NOT blow small N up to 128 ------
    N_p = _round_up(N, _LANE) if N >= _LANE else _round_up(N, _SUBLANE)
    D_p = _round_up(D, _LANE)

    # --- graphs per grid step (lane-stacked, independent chains) --------------
    if graphs_per_block is None:
        graphs_per_block = 2 if (B >= 2 and B % 2 == 0) else 1
    G = graphs_per_block if (graphs_per_block >= 1 and B % graphs_per_block == 0) else 1
    nb = B // G
    GD = G * D_p

    # --- precompute operator powers once, in bf16 (value-preserving zero pad) -
    adj_p = jnp.zeros((N_p, N_p), jnp.float32).at[:N, :N].set(adj.astype(jnp.float32))
    w_p = jnp.zeros((D_p, D_p), jnp.float32).at[:D, :D].set(w.astype(jnp.float32))
    a_pows_bf = _matrix_powers(adj_p).astype(jnp.bfloat16)             # (4, N_p, N_p)
    w_pows_f32 = _matrix_powers(w_p)                                   # (4, D_p, D_p)
    eye_g = jnp.eye(G, dtype=jnp.float32)
    bw_pows_bf = jnp.stack(
        [jnp.kron(eye_g, w_pows_f32[k]) for k in range(_NUM_POWERS)]
    ).astype(jnp.bfloat16)                                             # (4, GD, GD)

    # --- lane-stack G graphs per block: (B, N_p, D_p) -> (nb, N_p, G*D_p) -----
    h_p = jnp.zeros((B, N_p, D_p), jnp.float32).at[:, :N, :D].set(h.astype(jnp.float32))
    h_blk = h_p.reshape(nb, G, N_p, D_p).transpose(0, 2, 1, 3).reshape(nb, N_p, GD)

    dt = float(T) / float(num_steps)
    kernel = functools.partial(_ode_rk4_linear_kernel, dt=dt, num_steps=num_steps)

    # --- generation-aware VMEM budget -----------------------------------------
    try:
        vmem_capacity = int(pltpu.get_tpu_info().vmem_capacity_bytes)
    except Exception:
        vmem_capacity = 64 << 20            # conservative: v7x per-TensorCore VMEM
    vmem_ceiling = int(vmem_capacity * 0.8)  # leave compiler-scratch / spill headroom

    def _invoke(single_buffer_shared):
        shared_kwargs = (
            dict(pipeline_mode=pl.Buffered(1)) if single_buffer_shared else {}
        )
        a_spec = pl.BlockSpec((_NUM_POWERS, N_p, N_p), lambda b: (0, 0, 0),
                              **shared_kwargs)
        w_spec = pl.BlockSpec((_NUM_POWERS, GD, GD), lambda b: (0, 0, 0),
                              **shared_kwargs)
        h_spec = pl.BlockSpec((None, N_p, GD), lambda b: (b, 0, 0))
        out_spec = pl.BlockSpec((None, N_p, GD), lambda b: (b, 0, 0))

        shared_bufs = 1 if single_buffer_shared else 2
        vmem_need = (
            shared_bufs * (a_pows_bf.size + bw_pows_bf.size) * 2   # bf16 A^k / W^k
            + 2 * 2 * N_p * GD * 4                                 # dbl-buffered h/out (f32)
            + 6 * N_p * GD * 4                                     # carry + terms + bf16 copies
            + (4 << 20)                                            # compiler scratch headroom
        )
        vmem_limit = int(min(max(vmem_need, 32 << 20), vmem_ceiling))

        return pl.pallas_call(
            kernel,
            out_shape=jax.ShapeDtypeStruct((nb, N_p, GD), jnp.float32),
            grid=(nb,),
            in_specs=[a_spec, w_spec, h_spec],
            out_specs=out_spec,
            compiler_params=pltpu.CompilerParams(
                dimension_semantics=("parallel",),   # shard graph-blocks across TCs
                vmem_limit_bytes=vmem_limit,
            ),
        )(a_pows_bf, bw_pows_bf, h_blk)

    try:
        out_blk = _invoke(True)
    except Exception:
        # pl.Buffered(1) / pipeline_mode not supported by this jax version:
        # fall back to default double-buffering of the grid-invariant operands.
        out_blk = _invoke(False)

    # --- un-stack lanes, strip padding -----------------------------------------
    out_p = out_blk.reshape(nb, N_p, G, D_p).transpose(0, 2, 1, 3).reshape(B, N_p, D_p)
    out = out_p[:, :N, :D].astype(h.dtype)
    return out[0] if squeeze else out


def _reference_forward(a_pows_bf, w_pows_bf, h, dt: float, num_steps: int):
    """Plain-JAX reference replaying the SAME math as the kernel (precomputed
    bf16 operator powers, f32 accumulation, linearized RK4) on one graph."""
    coeffs = (dt, dt * dt / 2.0, dt ** 3 / 6.0, dt ** 4 / 24.0)

    def step(_, x):
        xb = x.astype(jnp.bfloat16)
        acc = x
        for k in range(_NUM_POWERS):
            ah = jnp.dot(a_pows_bf[k], xb, preferred_element_type=jnp.float32)
            acc = acc + coeffs[k] * jnp.dot(ah.astype(jnp.bfloat16), w_pows_bf[k],
                                            preferred_element_type=jnp.float32)
        return acc

    return lax.fori_loop(0, num_steps, step, h.astype(jnp.float32))


def _build_normalized_adjacency(n_nodes: int) -> jnp.ndarray:
    """Deterministic ring graph + self loops, sym-normalized: D^-1/2 (A+I) D^-1/2."""
    idx = jnp.arange(n_nodes)
    a = jnp.zeros((n_nodes, n_nodes), jnp.float32)
    a = a.at[idx, (idx + 1) % n_nodes].set(1.0)
    a = a.at[(idx + 1) % n_nodes, idx].set(1.0)
    a = a + jnp.eye(n_nodes, dtype=jnp.float32)
    deg = jnp.sum(a, axis=1)
    d_inv_sqrt = 1.0 / jnp.sqrt(deg)
    return a * d_inv_sqrt[:, None] * d_inv_sqrt[None, :]


if __name__ == "__main__":
    # Small, deterministic problem: 2 graphs, 16 nodes, 32 hidden features.
    BATCH = 2
    N_NODES = 16
    HIDDEN = 32
    T = 1
    NUM_STEPS = 32

    key = jax.random.PRNGKey(0)
    k_h, k_w = jax.random.split(key)

    h0 = jax.random.normal(k_h, (BATCH, N_NODES, HIDDEN), dtype=jnp.float32)
    w = jax.random.normal(k_w, (HIDDEN, HIDDEN), dtype=jnp.float32) / jnp.sqrt(
        jnp.float32(HIDDEN)
    )
    adj = _build_normalized_adjacency(N_NODES)

    out = jax.block_until_ready(
        ode_block_forward(adj, w, h0, T=T, num_steps=NUM_STEPS)
    )

    # Reference: identical math on unpadded operands (zero padding is exact).
    a_pows_ref_bf = _matrix_powers(adj.astype(jnp.float32)).astype(jnp.bfloat16)
    w_pows_ref_bf = _matrix_powers(w.astype(jnp.float32)).astype(jnp.bfloat16)
    dt = float(T) / float(NUM_STEPS)
    ref = jax.block_until_ready(
        jax.vmap(
            lambda hb: _reference_forward(a_pows_ref_bf, w_pows_ref_bf, hb, dt, NUM_STEPS)
        )(h0)
    )

    assert out.shape == (BATCH, N_NODES, HIDDEN)
    assert jnp.allclose(out, ref, rtol=2e-3, atol=2e-3), "Pallas kernel mismatch vs JAX ref"

    print("KERNEL_OK")
</pallas_src>

<mosaic_0001>
module attributes {stable_mosaic.version = 11 : i64} {
  func.func @_ode_rk4_linear_kernel(%arg0: i32, %arg1: memref<4x16x16xbf16, #tpu.memory_space<vmem>>, %arg2: memref<4x256x256xbf16, #tpu.memory_space<vmem>>, %arg3: memref<1x16x256xf32, #tpu.memory_space<vmem>>, %arg4: memref<1x16x256xf32, #tpu.memory_space<vmem>>) attributes {dimension_semantics = [#tpu.dimension_semantics<parallel>], iteration_bounds = array<i64: 1>, scalar_prefetch = 0 : i64, scratch_operands = 0 : i64, tpu.core_type = #tpu.core_type<tc>, window_params = [{pipeline_mode = #tpu.pipeline_mode<synchronous>, transform_indices = @transform_0, window_bounds = array<i64: 4, 16, 16>}, {pipeline_mode = #tpu.pipeline_mode<synchronous>, transform_indices = @transform_1, window_bounds = array<i64: 4, 256, 256>}, {transform_indices = @transform_2, window_bounds = array<i64: 1, 16, 256>}, {transform_indices = @transform_3, window_bounds = array<i64: 1, 16, 256>}]} {
    %c0 = arith.constant 0 : index
    %c0_0 = arith.constant 0 : index
    %c0_1 = arith.constant 0 : index
    %0 = vector.load %arg3[%c0, %c0_0, %c0_1] : memref<1x16x256xf32, #tpu.memory_space<vmem>>, vector<1x16x256xf32>
    %1 = vector.shape_cast %0 : vector<1x16x256xf32> to vector<16x256xf32>
    %c0_i32 = arith.constant 0 : i32
    %c32_i32 = arith.constant 32 : i32
    %2 = arith.addi %c0_i32, %c32_i32 : i32
    %c1_i32 = arith.constant 1 : i32
    %3 = scf.for %arg5 = %c0_i32 to %2 step %c1_i32 iter_args(%arg6 = %1) -> (vector<16x256xf32>)  : i32 {
      %7 = arith.truncf %arg6 : vector<16x256xf32> to vector<16x256xbf16>
      %c0_5 = arith.constant 0 : index
      %c0_6 = arith.constant 0 : index
      %c0_7 = arith.constant 0 : index
      %8 = vector.load %arg1[%c0_5, %c0_6, %c0_7] : memref<4x16x16xbf16, #tpu.memory_space<vmem>>, vector<1x16x16xbf16>
      %9 = vector.shape_cast %8 : vector<1x16x16xbf16> to vector<16x16xbf16>
      %cst = arith.constant dense<0.000000e+00> : vector<16x256xf32>
      %10 = tpu.matmul %9, %7, %cst {dimension_numbers = #tpu.dot_dimension_numbers<[1], [0], [0], [1], [0, 0, 1, 1], [], []>} : vector<16x16xbf16>, vector<16x256xbf16>, vector<16x256xf32> -> vector<16x256xf32>
      %11 = arith.truncf %10 : vector<16x256xf32> to vector<16x256xbf16>
      %c0_8 = arith.constant 0 : index
      %c0_9 = arith.constant 0 : index
      %c0_10 = arith.constant 0 : index
      %12 = vector.load %arg2[%c0_8, %c0_9, %c0_10] : memref<4x256x256xbf16, #tpu.memory_space<vmem>>, vector<1x256x256xbf16>
      %13 = vector.shape_cast %12 : vector<1x256x256xbf16> to vector<256x256xbf16>
      %cst_11 = arith.constant dense<0.000000e+00> : vector<16x256xf32>
      %14 = tpu.matmul %11, %13, %cst_11 {dimension_numbers = #tpu.dot_dimension_numbers<[1], [0], [0], [1], [0, 0, 1, 1], [], []>} : vector<16x256xbf16>, vector<256x256xbf16>, vector<16x256xf32> -> vector<16x256xf32>
      %cst_12 = arith.constant 3.125000e-02 : f32
      %15 = vector.broadcast %cst_12 : f32 to vector<16x256xf32>
      %16 = arith.mulf %15, %14 : vector<16x256xf32>
      %17 = arith.addf %arg6, %16 : vector<16x256xf32>
      %c1 = arith.constant 1 : index
      %c0_13 = arith.constant 0 : index
      %c0_14 = arith.constant 0 : index
      %18 = vector.load %arg1[%c1, %c0_13, %c0_14] : memref<4x16x16xbf16, #tpu.memory_space<vmem>>, vector<1x16x16xbf16>
      %19 = vector.shape_cast %18 : vector<1x16x16xbf16> to vector<16x16xbf16>
      %cst_15 = arith.constant dense<0.000000e+00> : vector<16x256xf32>
      %20 = tpu.matmul %19, %7, %cst_15 {dimension_numbers = #tpu.dot_dimension_numbers<[1], [0], [0], [1], [0, 0, 1, 1], [], []>} : vector<16x16xbf16>, vector<16x256xbf16>, vector<16x256xf32> -> vector<16x256xf32>
      %21 = arith.truncf %20 : vector<16x256xf32> to vector<16x256xbf16>
      %c1_16 = arith.constant 1 : index
      %c0_17 = arith.constant 0 : index
      %c0_18 = arith.constant 0 : index
      %22 = vector.load %arg2[%c1_16, %c0_17, %c0_18] : memref<4x256x256xbf16, #tpu.memory_space<vmem>>, vector<1x256x256xbf16>
      %23 = vector.shape_cast %22 : vector<1x256x256xbf16> to vector<256x256xbf16>
      %cst_19 = arith.constant dense<0.000000e+00> : vector<16x256xf32>
      %24 = tpu.matmul %21, %23, %cst_19 {dimension_numbers = #tpu.dot_dimension_numbers<[1], [0], [0], [1], [0, 0, 1, 1], [], []>} : vector<16x256xbf16>, vector<256x256xbf16>, vector<16x256xf32> -> vector<16x256xf32>
      %cst_20 = arith.constant 4.8828125E-4 : f32
      %25 = vector.broadcast %cst_20 : f32 to vector<16x256xf32>
      %26 = arith.mulf %25, %24 : vector<16x256xf32>
      %27 = arith.addf %17, %26 : vector<16x256xf32>
      %c2 = arith.constant 2 : index
      %c0_21 = arith.constant 0 : index
      %c0_22 = arith.constant 0 : index
      %28 = vector.load %arg1[%c2, %c0_21, %c0_22] : memref<4x16x16xbf16, #tpu.memory_space<vmem>>, vector<1x16x16xbf16>
      %29 = vector.shape_cast %28 : vector<1x16x16xbf16> to vector<16x16xbf16>
      %cst_23 = arith.constant dense<0.000000e+00> : vector<16x256xf32>
      %30 = tpu.matmul %29, %7, %cst_23 {dimension_numbers = #tpu.dot_dimension_numbers<[1], [0], [0], [1], [0, 0, 1, 1], [], []>} : vector<16x16xbf16>, vector<16x256xbf16>, vector<16x256xf32> -> vector<16x256xf32>
      %31 = arith.truncf %30 : vector<16x256xf32> to vector<16x256xbf16>
      %c2_24 = arith.constant 2 : index
      %c0_25 = arith.constant 0 : index
      %c0_26 = arith.constant 0 : index
      %32 = vector.load %arg2[%c2_24, %c0_25, %c0_26] : memref<4x256x256xbf16, #tpu.memory_space<vmem>>, vector<1x256x256xbf16>
      %33 = vector.shape_cast %32 : vector<1x256x256xbf16> to vector<256x256xbf16>
      %cst_27 = arith.constant dense<0.000000e+00> : vector<16x256xf32>
      %34 = tpu.matmul %31, %33, %cst_27 {dimension_numbers = #tpu.dot_dimension_numbers<[1], [0], [0], [1], [0, 0, 1, 1], [], []>} : vector<16x256xbf16>, vector<256x256xbf16>, vector<16x256xf32> -> vector<16x256xf32>
      %cst_28 = arith.constant 5.08626317E-6 : f32
      %35 = vector.broadcast %cst_28 : f32 to vector<16x256xf32>
      %36 = arith.mulf %35, %34 : vector<16x256xf32>
      %37 = arith.addf %27, %36 : vector<16x256xf32>
      %c3 = arith.constant 3 : index
      %c0_29 = arith.constant 0 : index
      %c0_30 = arith.constant 0 : index
      %38 = vector.load %arg1[%c3, %c0_29, %c0_30] : memref<4x16x16xbf16, #tpu.memory_space<vmem>>, vector<1x16x16xbf16>
      %39 = vector.shape_cast %38 : vector<1x16x16xbf16> to vector<16x16xbf16>
      %cst_31 = arith.constant dense<0.000000e+00> : vector<16x256xf32>
      %40 = tpu.matmul %39, %7, %cst_31 {dimension_numbers = #tpu.dot_dimension_numbers<[1], [0], [0], [1], [0, 0, 1, 1], [], []>} : vector<16x16xbf16>, vector<16x256xbf16>, vector<16x256xf32> -> vector<16x256xf32>
      %41 = arith.truncf %40 : vector<16x256xf32> to vector<16x256xbf16>
      %c3_32 = arith.constant 3 : index
      %c0_33 = arith.constant 0 : index
      %c0_34 = arith.constant 0 : index
      %42 = vector.load %arg2[%c3_32, %c0_33, %c0_34] : memref<4x256x256xbf16, #tpu.memory_space<vmem>>, vector<1x256x256xbf16>
      %43 = vector.shape_cast %42 : vector<1x256x256xbf16> to vector<256x256xbf16>
      %cst_35 = arith.constant dense<0.000000e+00> : vector<16x256xf32>
      %44 = tpu.matmul %41, %43, %cst_35 {dimension_numbers = #tpu.dot_dimension_numbers<[1], [0], [0], [1], [0, 0, 1, 1], [], []>} : vector<16x256xbf16>, vector<256x256xbf16>, vector<16x256xf32> -> vector<16x256xf32>
      %cst_36 = arith.constant 3.9736431E-8 : f32
      %45 = vector.broadcast %cst_36 : f32 to vector<16x256xf32>
      %46 = arith.mulf %45, %44 : vector<16x256xf32>
      %47 = arith.addf %37, %46 : vector<16x256xf32>
      scf.yield %47 : vector<16x256xf32>
    }
    %c0_2 = arith.constant 0 : index
    %c0_3 = arith.constant 0 : index
    %c0_4 = arith.constant 0 : index
    %4 = vector.load %arg4[%c0_2, %c0_3, %c0_4] : memref<1x16x256xf32, #tpu.memory_space<vmem>>, vector<1x16x256xf32>
    %5 = vector.shape_cast %4 : vector<1x16x256xf32> to vector<16x256xf32>
    %6 = vector.shape_cast %3 : vector<16x256xf32> to vector<1x16x256xf32>
    tpu.vector_store %arg4[%c0_2, %c0_3, %c0_4], %6 {strides = array<i32>} : memref<1x16x256xf32, #tpu.memory_space<vmem>>, vector<1x16x256xf32>,
    return
  }
  func.func @transform_0(%arg0: i32) -> (i32, i32, i32) {
    %c0_i32 = arith.constant 0 : i32
    %c0_i32_0 = arith.constant 0 : i32
    %c0_i32_1 = arith.constant 0 : i32
    %c0_i32_2 = arith.constant 0 : i32
    return %c0_i32, %c0_i32_0, %c0_i32_1 : i32, i32, i32
  }
  func.func @transform_1(%arg0: i32) -> (i32, i32, i32) {
    %c0_i32 = arith.constant 0 : i32
    %c0_i32_0 = arith.constant 0 : i32
    %c0_i32_1 = arith.constant 0 : i32
    %c0_i32_2 = arith.constant 0 : i32
    return %c0_i32, %c0_i32_0, %c0_i32_1 : i32, i32, i32
  }
  func.func @transform_2(%arg0: i32) -> (i32, i32, i32) {
    %c0_i32 = arith.constant 0 : i32
    %c0_i32_0 = arith.constant 0 : i32
    %c0_i32_1 = arith.constant 0 : i32
    return %arg0, %c0_i32, %c0_i32_0 : i32, i32, i32
  }
  func.func @transform_3(%arg0: i32) -> (i32, i32, i32) {
    %c0_i32 = arith.constant 0 : i32
    %c0_i32_0 = arith.constant 0 : i32
    %c0_i32_1 = arith.constant 0 : i32
    return %arg0, %c0_i32, %c0_i32_0 : i32, i32, i32
  }
}

module attributes {stable_mosaic.version = 11 : i64} {
  func.func @_ode_rk4_linear_kernel(%arg0: i32, %arg1: memref<4x16x16xbf16, #tpu.memory_space<vmem>>, %arg2: memref<4x256x256xbf16, #tpu.memory_space<vmem>>, %arg3: memref<1x16x256xf32, #tpu.memory_space<vmem>>, %arg4: memref<1x16x256xf32, #tpu.memory_space<vmem>>) attributes {dimension_semantics = [#tpu.dimension_semantics<parallel>], iteration_bounds = array<i64: 1>, scalar_prefetch = 0 : i64, scratch_operands = 0 : i64, tpu.core_type = #tpu.core_type<tc>, window_params = [{pipeline_mode = #tpu.pipeline_mode<synchronous>, transform_indices = @transform_0, window_bounds = array<i64: 4, 16, 16>}, {pipeline_mode = #tpu.pipeline_mode<synchronous>, transform_indices = @transform_1, window_bounds = array<i64: 4, 256, 256>}, {transform_indices = @transform_2, window_bounds = array<i64: 1, 16, 256>}, {transform_indices = @transform_3, window_bounds = array<i64: 1, 16, 256>}]} {
    %c0 = arith.constant 0 : index
    %c0_0 = arith.constant 0 : index
    %c0_1 = arith.constant 0 : index
    %0 = vector.load %arg3[%c0, %c0_0, %c0_1] : memref<1x16x256xf32, #tpu.memory_space<vmem>>, vector<1x16x256xf32>
    %1 = vector.shape_cast %0 : vector<1x16x256xf32> to vector<16x256xf32>
    %c0_i32 = arith.constant 0 : i32
    %c32_i32 = arith.constant 32 : i32
    %2 = arith.addi %c0_i32, %c32_i32 : i32
    %c1_i32 = arith.constant 1 : i32
    %3 = scf.for %arg5 = %c0_i32 to %2 step %c1_i32 iter_args(%arg6 = %1) -> (vector<16x256xf32>)  : i32 {
      %7 = arith.truncf %arg6 : vector<16x256xf32> to vector<16x256xbf16>
      %c0_5 = arith.constant 0 : index
      %c0_6 = arith.constant 0 : index
      %c0_7 = arith.constant 0 : index
      %8 = vector.load %arg1[%c0_5, %c0_6, %c0_7] : memref<4x16x16xbf16, #tpu.memory_space<vmem>>, vector<1x16x16xbf16>
      %9 = vector.shape_cast %8 : vector<1x16x16xbf16> to vector<16x16xbf16>
      %cst = arith.constant dense<0.000000e+00> : vector<16x256xf32>
      %10 = tpu.matmul %9, %7, %cst {dimension_numbers = #tpu.dot_dimension_numbers<[1], [0], [0], [1], [0, 0, 1, 1], [], []>} : vector<16x16xbf16>, vector<16x256xbf16>, vector<16x256xf32> -> vector<16x256xf32>
      %11 = arith.truncf %10 : vector<16x256xf32> to vector<16x256xbf16>
      %c0_8 = arith.constant 0 : index
      %c0_9 = arith.constant 0 : index
      %c0_10 = arith.constant 0 : index
      %12 = vector.load %arg2[%c0_8, %c0_9, %c0_10] : memref<4x256x256xbf16, #tpu.memory_space<vmem>>, vector<1x256x256xbf16>
      %13 = vector.shape_cast %12 : vector<1x256x256xbf16> to vector<256x256xbf16>
      %cst_11 = arith.constant dense<0.000000e+00> : vector<16x256xf32>
      %14 = tpu.matmul %11, %13, %cst_11 {dimension_numbers = #tpu.dot_dimension_numbers<[1], [0], [0], [1], [0, 0, 1, 1], [], []>} : vector<16x256xbf16>, vector<256x256xbf16>, vector<16x256xf32> -> vector<16x256xf32>
      %cst_12 = arith.constant 3.125000e-02 : f32
      %15 = vector.broadcast %cst_12 : f32 to vector<16x256xf32>
      %16 = arith.mulf %15, %14 : vector<16x256xf32>
      %17 = arith.addf %arg6, %16 : vector<16x256xf32>
      %c1 = arith.constant 1 : index
      %c0_13 = arith.constant 0 : index
      %c0_14 = arith.constant 0 : index
      %18 = vector.load %arg1[%c1, %c0_13, %c0_14] : memref<4x16x16xbf16, #tpu.memory_space<vmem>>, vector<1x16x16xbf16>
      %19 = vector.shape_cast %18 : vector<1x16x16xbf16> to vector<16x16xbf16>
      %cst_15 = arith.constant dense<0.000000e+00> : vector<16x256xf32>
      %20 = tpu.matmul %19, %7, %cst_15 {dimension_numbers = #tpu.dot_dimension_numbers<[1], [0], [0], [1], [0, 0, 1, 1], [], []>} : vector<16x16xbf16>, vector<16x256xbf16>, vector<16x256xf32> -> vector<16x256xf32>
      %21 = arith.truncf %20 : vector<16x256xf32> to vector<16x256xbf16>
      %c1_16 = arith.constant 1 : index
      %c0_17 = arith.constant 0 : index
      %c0_18 = arith.constant 0 : index
      %22 = vector.load %arg2[%c1_16, %c0_17, %c0_18] : memref<4x256x256xbf16, #tpu.memory_space<vmem>>, vector<1x256x256xbf16>
      %23 = vector.shape_cast %22 : vector<1x256x256xbf16> to vector<256x256xbf16>
      %cst_19 = arith.constant dense<0.000000e+00> : vector<16x256xf32>
      %24 = tpu.matmul %21, %23, %cst_19 {dimension_numbers = #tpu.dot_dimension_numbers<[1], [0], [0], [1], [0, 0, 1, 1], [], []>} : vector<16x256xbf16>, vector<256x256xbf16>, vector<16x256xf32> -> vector<16x256xf32>
      %cst_20 = arith.constant 4.8828125E-4 : f32
      %25 = vector.broadcast %cst_20 : f32 to vector<16x256xf32>
      %26 = arith.mulf %25, %24 : vector<16x256xf32>
      %27 = arith.addf %17, %26 : vector<16x256xf32>
      %c2 = arith.constant 2 : index
      %c0_21 = arith.constant 0 : index
      %c0_22 = arith.constant 0 : index
      %28 = vector.load %arg1[%c2, %c0_21, %c0_22] : memref<4x16x16xbf16, #tpu.memory_space<vmem>>, vector<1x16x16xbf16>
      %29 = vector.shape_cast %28 : vector<1x16x16xbf16> to vector<16x16xbf16>
      %cst_23 = arith.constant dense<0.000000e+00> : vector<16x256xf32>
      %30 = tpu.matmul %29, %7, %cst_23 {dimension_numbers = #tpu.dot_dimension_numbers<[1], [0], [0], [1], [0, 0, 1, 1], [], []>} : vector<16x16xbf16>, vector<16x256xbf16>, vector<16x256xf32> -> vector<16x256xf32>
      %31 = arith.truncf %30 : vector<16x256xf32> to vector<16x256xbf16>
      %c2_24 = arith.constant 2 : index
      %c0_25 = arith.constant 0 : index
      %c0_26 = arith.constant 0 : index
      %32 = vector.load %arg2[%c2_24, %c0_25, %c0_26] : memref<4x256x256xbf16, #tpu.memory_space<vmem>>, vector<1x256x256xbf16>
      %33 = vector.shape_cast %32 : vector<1x256x256xbf16> to vector<256x256xbf16>
      %cst_27 = arith.constant dense<0.000000e+00> : vector<16x256xf32>
      %34 = tpu.matmul %31, %33, %cst_27 {dimension_numbers = #tpu.dot_dimension_numbers<[1], [0], [0], [1], [0, 0, 1, 1], [], []>} : vector<16x256xbf16>, vector<256x256xbf16>, vector<16x256xf32> -> vector<16x256xf32>
      %cst_28 = arith.constant 5.08626317E-6 : f32
      %35 = vector.broadcast %cst_28 : f32 to vector<16x256xf32>
      %36 = arith.mulf %35, %34 : vector<16x256xf32>
      %37 = arith.addf %27, %36 : vector<16x256xf32>
      %c3 = arith.constant 3 : index
      %c0_29 = arith.constant 0 : index
      %c0_30 = arith.constant 0 : index
      %38 = vector.load %arg1[%c3, %c0_29, %c0_30] : memref<4x16x16xbf16, #tpu.memory_space<vmem>>, vector<1x16x16xbf16>
      %39 = vector.shape_cast %38 : vector<1x16x16xbf16> to vector<16x16xbf16>
      %cst_31 = arith.constant dense<0.000000e+00> : vector<16x256xf32>
      %40 = tpu.matmul %39, %7, %cst_31 {dimension_numbers = #tpu.dot_dimension_numbers<[1], [0], [0], [1], [0, 0, 1, 1], [], []>} : vector<16x16xbf16>, vector<16x256xbf16>, vector<16x256xf32> -> vector<16x256xf32>
      %41 = arith.truncf %40 : vector<16x256xf32> to vector<16x256xbf16>
      %c3_32 = arith.constant 3 : index
      %c0_33 = arith.constant 0 : index
      %c0_34 = arith.constant 0 : index
      %42 = vector.load %arg2[%c3_32, %c0_33, %c0_34] : memref<4x256x256xbf16, #tpu.memory_space<vmem>>, vector<1x256x256xbf16>
      %43 = vector.shape_cast %42 : vector<1x256x256xbf16> to vector<256x256xbf16>
      %cst_35 = arith.constant dense<0.000000e+00> : vector<16x256xf32>
      %44 = tpu.matmul %41, %43, %cst_35 {dimension_numbers = #tpu.dot_dimension_numbers<[1], [0], [0], [1], [0, 0, 1, 1], [], []>} : vector<16x256xbf16>, vector<256x256xbf16>, vector<16x256xf32> -> vector<16x256xf32>
      %cst_36 = arith.constant 3.9736431E-8 : f32
      %45 = vector.broadcast %cst_36 : f32 to vector<16x256xf32>
      %46 = arith.mulf %45, %44 : vector<16x256xf32>
      %47 = arith.addf %37, %46 : vector<16x256xf32>
      scf.yield %47 : vector<16x256xf32>
    }
    %c0_2 = arith.constant 0 : index
    %c0_3 = arith.constant 0 : index
    %c0_4 = arith.constant 0 : index
    %4 = vector.load %arg4[%c0_2, %c0_3, %c0_4] : memref<1x16x256xf32, #tpu.memory_space<vmem>>, vector<1x16x256xf32>
    %5 = vector.shape_cast %4 : vector<1x16x256xf32> to vector<16x256xf32>
    %6 = vector.shape_cast %3 : vector<16x256xf32> to vector<1x16x256xf32>
    tpu.vector_store %arg4[%c0_2, %c0_3, %c0_4], %6 {strides = array<i32>} : memref<1x16x256xf32, #tpu.memory_space<vmem>>, vector<1x16x256xf32>,
    return
  }
  func.func @transform_0(%arg0: i32) -> (i32, i32, i32) {
    %c0_i32 = arith.constant 0 : i32
    %c0_i32_0 = arith.constant 0 : i32
    %c0_i32_1 = arith.constant 0 : i32
    %c0_i32_2 = arith.constant 0 : i32
    return %c0_i32, %c0_i32_0, %c0_i32_1 : i32, i32, i32
  }
  func.func @transform_1(%arg0: i32) -> (i32, i32, i32) {
    %c0_i32 = arith.constant 0 : i32
    %c0_i32_0 = arith.constant 0 : i32
    %c0_i32_1 = arith.constant 0 : i32
    %c0_i32_2 = arith.constant 0 : i32
    return %c0_i32, %c0_i32_0, %c0_i32_1 : i32, i32, i32
  }
  func.func @transform_2(%arg0: i32) -> (i32, i32, i32) {
    %c0_i32 = arith.constant 0 : i32
    %c0_i32_0 = arith.constant 0 : i32
    %c0_i32_1 = arith.constant 0 : i32
    return %arg0, %c0_i32, %c0_i32_0 : i32, i32, i32
  }
  func.func @transform_3(%arg0: i32) -> (i32, i32, i32) {
    %c0_i32 = arith.constant 0 : i32
    %c0_i32_0 = arith.constant 0 : i32
    %c0_i32_1 = arith.constant 0 : i32
    return %arg0, %c0_i32, %c0_i32_0 : i32, i32, i32
  }
}

</mosaic_0001>

<bundles_post_ra>
// kernel: tpu_custom_call.1
= control target key start
LH: loop header
LB: loop body
LE: loop exit
PB: predicated region body
PF: predicated region fallthrough
CT: control target
= control target key end

     0   :  { %8 = vsyncpa [#allocation3], 0  ;;  %s2307_s0 = inlined_call_operand.hbm [shape: bf16[4,16,16], index: 0, kind: input, shape index: {}]   ;;  %s2308_s1 = inlined_call_operand.hbm [shape: bf16[4,256,256], index: 1, kind: input, shape index: {}]   ;;  %s2309_s2 = inlined_call_operand.hbm [shape: f32[1,16,256], index: 2, kind: input, shape index: {}]   ;;  %s2310_s3 = inlined_call_operand.hbm [shape: f32[1,16,256], index: 3, kind: output, shape index: {}]  }
   0x1   :  { %9 = vsyncpa [#allocation6], 0  ;;  %s28_s14 = sshll.u32 %s2308_s1, 4  ;;  %s29_s14 = int_to_ptr.hbm [resolvable:$true] %s28_s14 }
   0x2   :  { %10 = vsyncpa [#allocation4], 0  ;;  %s2171_s15 = smov [#allocation5]   ;;  %s15_s19 = sshll.u32 %s2307_s0, 4  ;;  %s16_s19 = int_to_ptr.hbm [resolvable:$true] %s15_s19 }
   0x3   :  { %s30_s16 = sshll.u32 %s2171_s15, 4  ;;  %s2172_s20 = smov 128   ;;  %s31_s16 = int_to_ptr.vmem [resolvable:$true] %s30_s16 }
   0x4   :  { %s2173_s21 = smov 8   ;;  %s2174_s22 = smov [#allocation2]  }
   0x5   :  { %36 = dma.hbm_to_vmem [thread:$0]  %s29_s14, 16384, %s31_s16, [#allocation6], %s2172_s20, %s2172_s20, %s2173_s21  }
   0x6   :  { %s17_s23 = sshll.u32 %s2174_s22, 4  ;;  %s2175_s24 = smov 64   ;;  %s18_s23 = int_to_ptr.vmem [resolvable:$true] %s17_s23 }
   0x7   :  { %s2176_s25 = smov 4   ;;  %s41_s27 = sshll.u32 %s2309_s2, 4  ;;  %s42_s27 = int_to_ptr.hbm [resolvable:$true] %s41_s27 }
   0x8   :  { %23 = dma.hbm_to_vmem [thread:$0]  %s16_s19, 512, %s18_s23, [#allocation3], %s2175_s24, %s2175_s24, %s2176_s25  }
   0x9   :  { %s2177_s28 = smov [#allocation7]   ;;  %s2178_s30 = smov 256  }
   0xa   :  { %s43_s29 = sshll.u32 %s2177_s28, 4  ;;  %s2179_s0 = smov 16   ;;  %s44_s29 = int_to_ptr.vmem [resolvable:$true] %s43_s29 }
   0xb   :  { %49 = dma.hbm_to_vmem [thread:$0]  %s42_s27, 512, %s44_s29, [#allocation6], %s2178_s30, %s2178_s30, %s2179_s0  }
   0xc   :  { %2145 = dma.done.wait [#allocation3], 512  }
   0xd   :  { %2146 = vsyncadd [#allocation3], 4294966784 }
   0xe   :  { %2147 = dma.done.wait [#allocation6], 16896  }
   0xf   :  { %2148 = vsyncadd [#allocation6], 4294950400  ;;  %v63_v0 = vld [vmem:[#allocation7] sm:$0xff]   ;;  %v64_v1 = vld [vmem:[#allocation7 + $0x8] sm:$0xff]   ;;  %s2221_s2 = smov 0  }
  0x10   :  { %v65_v2 = vld [vmem:[#allocation7 + $0x10] sm:$0xff]   ;;  %v66_v3 = vld [vmem:[#allocation7 + $0x18] sm:$0xff]  }
  0x11 LB: > { %v1375_v4 = vld [vmem:[#allocation5 + $0x70] sm:$0xf]  ;;  %v1863_v5 = vld [vmem:[#allocation5 + $0x74] sm:$0xf0]  ;;  %v1862_v8 = vld [vmem:[#allocation5 + $0x74] sm:$0xf]  ;;  %v2240_v9 = vpack.c.bf16 %v2157_v2, %v2165_v0  ;;  %v2244_v10 = vpack.c.bf16 %v2153_v3, %v2161_v1  ;;  %s2169_s2 = sphi %s2221_s2, %s72_s2   ;;  %v2165_v0 = vphi %v63_v0, %v2314_v0   ;;  %v2161_v1 = vphi %v64_v1, %v2313_v1   ;;  %v2157_v2 = vphi %v65_v2, %v2312_v2   ;;  %v2153_v3 = vphi %v66_v3, %v2311_v3  }
  0x12   : > { %v1439_v6 = vld [vmem:[#allocation5 + $0xf0] sm:$0xf]  ;;  %v1879_v7 = vld [vmem:[#allocation5 + $0xf4] sm:$0xf0]  ;;  %v1847_v11 = vld [vmem:[#allocation2] sm:$0xff]  ;;  %vm86_vm0 = vcmask 130048   ;;  %v1376_v12 = vor.u32 %v1863_v5, %v1375_v4 }
  0x13   : > { %v1377_v13 = vld [vmem:[#allocation5 + $0x78] sm:$0xf0]  ;;  %v1878_v14 = vld [vmem:[#allocation5 + $0xf4] sm:$0xf]  ;;  %v1440_v15 = vor.u32 %v1879_v7, %v1439_v6  ;;  %v1367_v18 = vld [vmem:[#allocation5 + $0x60] sm:$0xf]  ;;  %97 = vmatpush.bf16.msra.mxu0 %v2240_v9  ;;  %111 = vmatpush.bf16.msra.mxu1 %v2244_v10 }
  0x14   : > { %v1380_v16 = vor.u32 %v1862_v8, %v1377_v13  ;;  %v1441_v17 = vld [vmem:[#allocation5 + $0xf8] sm:$0xf0]  ;;  %v1861_v19 = vld [vmem:[#allocation5 + $0x64] sm:$0xf0]  ;;  %v1431_v21 = vld [vmem:[#allocation5 + $0xe0] sm:$0xf]  ;;  %312 = vmatpush.bf16.msra.mxu2 %v1376_v12 }
  0x15   : > { %v1444_v20 = vor.u32 %v1878_v14, %v1441_v17  ;;  %v1877_v22 = vld [vmem:[#allocation5 + $0xe4] sm:$0xf0]  ;;  %v1860_v23 = vld [vmem:[#allocation5 + $0x64] sm:$0xf]  ;;  %326 = vmatpush.bf16.msra.mxu3 %v1440_v15  ;;  %v1368_v24 = vor.u32 %v1861_v19, %v1367_v18  ;;  %v1369_v26 = vld [vmem:[#allocation5 + $0x68] sm:$0xf0] }
  0x16   : > { %v1432_v25 = vor.u32 %v1877_v22, %v1431_v21  ;;  %v1876_v27 = vld [vmem:[#allocation5 + $0xe4] sm:$0xf]  ;;  %v1433_v28 = vld [vmem:[#allocation5 + $0xe8] sm:$0xf0]  ;;  %v1372_v29 = vor.u32 %v1860_v23, %v1369_v26  ;;  %v1359_v31 = vld [vmem:[#allocation5 + $0x50] sm:$0xf]  ;;  %1315 = vmatmul.msk.bf16.vlgmr.msra.gmra.mxu0 %vm86_vm0, %v1847_v11  ;;  %1316 = vmatmul.msk.bf16.vlgmr.msra.gmra.mxu1 %vm86_vm0, %v1847_v11 }
  0x17   : > { %340 = vmatpush.bf16.msrb.mxu0 %v1380_v16  ;;  %354 = vmatpush.bf16.msrb.mxu1 %v1444_v20  ;;  %v1436_v30 = vor.u32 %v1876_v27, %v1433_v28  ;;  %v1859_v32 = vld [vmem:[#allocation5 + $0x54] sm:$0xf0]  ;;  %v1423_v33 = vld [vmem:[#allocation5 + $0xd0] sm:$0xf]  ;;  %v1858_v35 = vld [vmem:[#allocation5 + $0x54] sm:$0xf] }
  0x18   : > { %v1875_v34 = vld [vmem:[#allocation5 + $0xd4] sm:$0xf0]  ;;  %v1361_v36 = vld [vmem:[#allocation5 + $0x58] sm:$0xf0]  ;;  %v1874_v37 = vld [vmem:[#allocation5 + $0xd4] sm:$0xf]  ;;  %313 = vmatpush.bf16.msra.mxu2 %v1368_v24  ;;  %v1360_v39 = vor.u32 %v1859_v32, %v1359_v31 }
  0x19   : > { %v1425_v38 = vld [vmem:[#allocation5 + $0xd8] sm:$0xf0]  ;;  %327 = vmatpush.bf16.msra.mxu3 %v1432_v25  ;;  %v1424_v40 = vor.u32 %v1875_v34, %v1423_v33  ;;  %v1351_v41 = vld [vmem:[#allocation5 + $0x40] sm:$0xf]  ;;  %v1857_v42 = vld [vmem:[#allocation5 + $0x44] sm:$0xf0]  ;;  %v1364_v43 = vor.u32 %v1858_v35, %v1361_v36 }
  0x1a   : > { %v1428_v44 = vor.u32 %v1874_v37, %v1425_v38  ;;  %v1415_v45 = vld [vmem:[#allocation5 + $0xc0] sm:$0xf]  ;;  %v1873_v46 = vld [vmem:[#allocation5 + $0xc4] sm:$0xf0]  ;;  %v1856_v47 = vld [vmem:[#allocation5 + $0x44] sm:$0xf]  ;;  %v1352_v51 = vor.u32 %v1857_v42, %v1351_v41 }
  0x1b   : > { %341 = vmatpush.bf16.msrb.mxu0 %v1372_v29  ;;  %355 = vmatpush.bf16.msrb.mxu1 %v1436_v30  ;;  %v1353_v48 = vld [vmem:[#allocation5 + $0x48] sm:$0xf0]  ;;  %v1872_v49 = vld [vmem:[#allocation5 + $0xc4] sm:$0xf]  ;;  %v1416_v52 = vor.u32 %v1873_v46, %v1415_v45  ;;  %v1343_v53 = vld [vmem:[#allocation5 + $0x30] sm:$0xf] }
  0x1c   : > { %v1417_v50 = vld [vmem:[#allocation5 + $0xc8] sm:$0xf0]  ;;  %314 = vmatpush.bf16.msra.mxu2 %v1360_v39  ;;  %v1855_v54 = vld [vmem:[#allocation5 + $0x34] sm:$0xf0]  ;;  %v1356_v55 = vor.u32 %v1856_v47, %v1353_v48  ;;  %v1407_v57 = vld [vmem:[#allocation5 + $0xb0] sm:$0xf] }
  0x1d   : > { %328 = vmatpush.bf16.msra.mxu3 %v1424_v40  ;;  %v1420_v56 = vor.u32 %v1872_v49, %v1417_v50  ;;  %v1871_v58 = vld [vmem:[#allocation5 + $0xb4] sm:$0xf0]  ;;  %v1854_v59 = vld [vmem:[#allocation5 + $0x34] sm:$0xf]  ;;  %v1345_v60 = vld [vmem:[#allocation5 + $0x38] sm:$0xf0]  ;;  %v1344_v63 = vor.u32 %v1855_v54, %v1343_v53 }
  0x1e   : > { %v1870_v61 = vld [vmem:[#allocation5 + $0xb4] sm:$0xf]  ;;  %v1409_v62 = vld [vmem:[#allocation5 + $0xb8] sm:$0xf0]  ;;  %v1408_v4 = vor.u32 %v1871_v58, %v1407_v57  ;;  %v1348_v5 = vor.u32 %v1854_v59, %v1345_v60  ;;  %v1335_v7 = vld [vmem:[#allocation5 + $0x20] sm:$0xf] }
  0x1f   : > { %342 = vmatpush.bf16.msrb.mxu0 %v1364_v43  ;;  %356 = vmatpush.bf16.msrb.mxu1 %v1428_v44  ;;  %v1412_v6 = vor.u32 %v1870_v61, %v1409_v62  ;;  %v1853_v8 = vld [vmem:[#allocation5 + $0x24] sm:$0xf0]  ;;  %v1399_v11 = vld [vmem:[#allocation5 + $0xa0] sm:$0xf]  ;;  %v1852_v14 = vld [vmem:[#allocation5 + $0x24] sm:$0xf] }
  0x20   : > { %315 = vmatpush.bf16.msra.mxu2 %v1352_v51  ;;  %v1336_v12 = vor.u32 %v1853_v8, %v1335_v7  ;;  %v1869_v13 = vld [vmem:[#allocation5 + $0xa4] sm:$0xf0]  ;;  %v1337_v15 = vld [vmem:[#allocation5 + $0x28] sm:$0xf0]  ;;  %v1868_v18 = vld [vmem:[#allocation5 + $0xa4] sm:$0xf] }
  0x21   : > { %329 = vmatpush.bf16.msra.mxu3 %v1416_v52  ;;  %v1400_v16 = vor.u32 %v1869_v13, %v1399_v11  ;;  %v1340_v17 = vor.u32 %v1852_v14, %v1337_v15  ;;  %v1401_v19 = vld [vmem:[#allocation5 + $0xa8] sm:$0xf0]  ;;  %v1327_v21 = vld [vmem:[#allocation5 + $0x10] sm:$0xf]  ;;  %v1851_v22 = vld [vmem:[#allocation5 + $0x14] sm:$0xf0] }
  0x22   : > { %v1404_v20 = vor.u32 %v1868_v18, %v1401_v19  ;;  %v1391_v23 = vld [vmem:[#allocation5 + $0x90] sm:$0xf]  ;;  %v1328_v24 = vor.u32 %v1851_v22, %v1327_v21  ;;  %v1867_v25 = vld [vmem:[#allocation5 + $0x94] sm:$0xf0]  ;;  %v1850_v26 = vld [vmem:[#allocation5 + $0x14] sm:$0xf] }
  0x23   : > { %343 = vmatpush.bf16.msrb.mxu0 %v1356_v55  ;;  %357 = vmatpush.bf16.msrb.mxu1 %v1420_v56  ;;  %v1329_v27 = vld [vmem:[#allocation5 + $0x18] sm:$0xf0]  ;;  %v1392_v28 = vor.u32 %v1867_v25, %v1391_v23  ;;  %v1866_v30 = vld [vmem:[#allocation5 + $0x94] sm:$0xf]  ;;  %v1319_v33 = vld [vmem:[#allocation5] sm:$0xf] }
  0x24   : > { %316 = vmatpush.bf16.msra.mxu2 %v1344_v63  ;;  %v1332_v29 = vor.u32 %v1850_v26, %v1329_v27  ;;  %v1393_v31 = vld [vmem:[#allocation5 + $0x98] sm:$0xf0]  ;;  %v1849_v34 = vld [vmem:[#allocation5 + $0x4] sm:$0xf0]  ;;  %v1383_v35 = vld [vmem:[#allocation5 + $0x80] sm:$0xf] }
  0x25   : > { %330 = vmatpush.bf16.msra.mxu3 %v1408_v4  ;;  %v1396_v32 = vor.u32 %v1866_v30, %v1393_v31  ;;  %v1320_v36 = vor.u32 %v1849_v34, %v1319_v33  ;;  %v1865_v37 = vld [vmem:[#allocation5 + $0x84] sm:$0xf0]  ;;  %v1848_v38 = vld [vmem:[#allocation5 + $0x4] sm:$0xf]  ;;  %v1321_v39 = vld [vmem:[#allocation5 + $0x8] sm:$0xf0] }
  0x26   : > { %v1384_v40 = vor.u32 %v1865_v37, %v1383_v35  ;;  %v1324_v41 = vor.u32 %v1848_v38, %v1321_v39  ;;  %v1864_v42 = vld [vmem:[#allocation5 + $0x84] sm:$0xf]  ;;  %v1385_v43 = vld [vmem:[#allocation5 + $0x88] sm:$0xf0]  ;;  %v1509_v52 = vld [vmem:[#allocation5 + $0x170] sm:$0xf] }
  0x27   : > { %344 = vmatpush.bf16.msrb.mxu0 %v1348_v5  ;;  %358 = vmatpush.bf16.msrb.mxu1 %v1412_v6  ;;  %v1388_v44 = vor.u32 %v1864_v42, %v1385_v43  ;;  %v1880_v51 = vld [vmem:[#allocation2 + $0x8] sm:$0xff]  ;;  %v1896_v53 = vld [vmem:[#allocation5 + $0x174] sm:$0xf0]  ;;  %v1573_v54 = vld [vmem:[#allocation5 + $0x1f0] sm:$0xf]  ;;  %s72_s2 = sadd.s32 1, %s2169_s2  }
  0x28   : > { %317 = vmatpush.bf16.msra.mxu2 %v1336_v12  ;;  %v1510_v55 = vor.u32 %v1896_v53, %v1509_v52  ;;  %v1912_v56 = vld [vmem:[#allocation5 + $0x1f4] sm:$0xf0]  ;;  %v1895_v57 = vld [vmem:[#allocation5 + $0x174] sm:$0xf]  ;;  %v1511_v58 = vld [vmem:[#allocation5 + $0x178] sm:$0xf0] }
  0x29   : > { %331 = vmatpush.bf16.msra.mxu3 %v1400_v16  ;;  %v1574_v59 = vor.u32 %v1912_v56, %v1573_v54  ;;  %v1514_v60 = vor.u32 %v1895_v57, %v1511_v58  ;;  %v1911_v61 = vld [vmem:[#allocation5 + $0x1f4] sm:$0xf]  ;;  %v1575_v62 = vld [vmem:[#allocation5 + $0x1f8] sm:$0xf0]  ;;  %v1501_v4 = vld [vmem:[#allocation5 + $0x160] sm:$0xf] }
  0x2a   : > { %v1578_v63 = vor.u32 %v1911_v61, %v1575_v62  ;;  %v1894_v5 = vld [vmem:[#allocation5 + $0x164] sm:$0xf0]  ;;  %v1565_v6 = vld [vmem:[#allocation5 + $0x1e0] sm:$0xf]  ;;  %v1893_v11 = vld [vmem:[#allocation5 + $0x164] sm:$0xf] }
  0x2b   : > { %345 = vmatpush.bf16.msrb.mxu0 %v1340_v17  ;;  %359 = vmatpush.bf16.msrb.mxu1 %v1404_v20  ;;  %v1502_v7 = vor.u32 %v1894_v5, %v1501_v4  ;;  %v1910_v8 = vld [vmem:[#allocation5 + $0x1e4] sm:$0xf0]  ;;  %v1503_v12 = vld [vmem:[#allocation5 + $0x168] sm:$0xf0]  ;;  %v1909_v15 = vld [vmem:[#allocation5 + $0x1e4] sm:$0xf] }
  0x2c   : > { %318 = vmatpush.bf16.msra.mxu2 %v1328_v24  ;;  %v1566_v13 = vor.u32 %v1910_v8, %v1565_v6  ;;  %v1506_v14 = vor.u32 %v1893_v11, %v1503_v12  ;;  %v1567_v16 = vld [vmem:[#allocation5 + $0x1e8] sm:$0xf0]  ;;  %v1493_v18 = vld [vmem:[#allocation5 + $0x150] sm:$0xf]  ;;  %v1892_v19 = vld [vmem:[#allocation5 + $0x154] sm:$0xf0] }
  0x2d   : > { %332 = vmatpush.bf16.msra.mxu3 %v1392_v28  ;;  %v1570_v17 = vor.u32 %v1909_v15, %v1567_v16  ;;  %v1557_v20 = vld [vmem:[#allocation5 + $0x1d0] sm:$0xf]  ;;  %v1494_v21 = vor.u32 %v1892_v19, %v1493_v18  ;;  %v1908_v22 = vld [vmem:[#allocation5 + $0x1d4] sm:$0xf0]  ;;  %v1891_v23 = vld [vmem:[#allocation5 + $0x154] sm:$0xf] }
  0x2e   : > { %v1495_v24 = vld [vmem:[#allocation5 + $0x158] sm:$0xf0]  ;;  %v1558_v25 = vor.u32 %v1908_v22, %v1557_v20  ;;  %v1907_v27 = vld [vmem:[#allocation5 + $0x1d4] sm:$0xf]  ;;  %v1485_v30 = vld [vmem:[#allocation5 + $0x140] sm:$0xf] }
  0x2f   : > { %346 = vmatpush.bf16.msrb.mxu0 %v1332_v29  ;;  %360 = vmatpush.bf16.msrb.mxu1 %v1396_v32  ;;  %v1498_v26 = vor.u32 %v1891_v23, %v1495_v24  ;;  %v1559_v28 = vld [vmem:[#allocation5 + $0x1d8] sm:$0xf0]  ;;  %v1890_v31 = vld [vmem:[#allocation5 + $0x144] sm:$0xf0]  ;;  %v1549_v32 = vld [vmem:[#allocation5 + $0x1c0] sm:$0xf] }
  0x30   : > { %319 = vmatpush.bf16.msra.mxu2 %v1320_v36  ;;  %v1562_v29 = vor.u32 %v1907_v27, %v1559_v28  ;;  %v1486_v33 = vor.u32 %v1890_v31, %v1485_v30  ;;  %v1906_v34 = vld [vmem:[#allocation5 + $0x1c4] sm:$0xf0]  ;;  %v1889_v35 = vld [vmem:[#allocation5 + $0x144] sm:$0xf]  ;;  %v1487_v36 = vld [vmem:[#allocation5 + $0x148] sm:$0xf0] }
  0x31   : > { %333 = vmatpush.bf16.msra.mxu3 %v1384_v40  ;;  %v1550_v37 = vor.u32 %v1906_v34, %v1549_v32  ;;  %v1490_v38 = vor.u32 %v1889_v35, %v1487_v36  ;;  %v1905_v39 = vld [vmem:[#allocation5 + $0x1c4] sm:$0xf]  ;;  %v1551_v40 = vld [vmem:[#allocation5 + $0x1c8] sm:$0xf0]  ;;  %v1477_v42 = vld [vmem:[#allocation5 + $0x130] sm:$0xf] }
  0x32   : > { %v1888_v43 = vld [vmem:[#allocation5 + $0x134] sm:$0xf0]  ;;  %v1543_v52 = vld [vmem:[#allocation5 + $0x1b8] sm:$0xf0]  ;;  %v1469_v54 = vld [vmem:[#allocation5 + $0x120] sm:$0xf] }
  0x33   : > { %347 = vmatpush.bf16.msrb.mxu0 %v1324_v41  ;;  %361 = vmatpush.bf16.msrb.mxu1 %v1388_v44  ;;  %v1554_v41 = vor.u32 %v1905_v39, %v1551_v40  ;;  %v1541_v44 = vld [vmem:[#allocation5 + $0x1b0] sm:$0xf]  ;;  %v1533_v56 = vld [vmem:[#allocation5 + $0x1a0] sm:$0xf]  ;;  %v1902_v58 = vld [vmem:[#allocation5 + $0x1a4] sm:$0xf0] }
  0x34   : > { %394 = vmatpush.bf16.msrb.mxu2 %v2240_v9  ;;  %v1534_v61 = vor.u32 %v1902_v58, %v1533_v56  ;;  %v1535_v4 = vld [vmem:[#allocation5 + $0x1a8] sm:$0xf0]  ;;  %v1461_v5 = vld [vmem:[#allocation5 + $0x110] sm:$0xf]  ;;  %v1900_v11 = vld [vmem:[#allocation5 + $0x194] sm:$0xf0] }
  0x35   : > { %408 = vmatpush.bf16.msrb.mxu3 %v2244_v10  ;;  %v1525_v8 = vld [vmem:[#allocation5 + $0x190] sm:$0xf]  ;;  %v1463_v15 = vld [vmem:[#allocation5 + $0x118] sm:$0xf0]  ;;  %v1899_v16 = vld [vmem:[#allocation5 + $0x194] sm:$0xf] }
  0x36   : > { %v1527_v18 = vld [vmem:[#allocation5 + $0x198] sm:$0xf0]  ;;  %v1453_v20 = vld [vmem:[#allocation5 + $0x100] sm:$0xf]  ;;  %v1898_v24 = vld [vmem:[#allocation5 + $0x184] sm:$0xf0] }
  0x37   : > { %610 = vmatpush.bf16.msra.mxu0 %v1510_v55  ;;  %624 = vmatpush.bf16.msra.mxu1 %v1574_v59  ;;  %v1886_v55 = vld [vmem:[#allocation5 + $0x124] sm:$0xf0]  ;;  %v1885_v59 = vld [vmem:[#allocation5 + $0x124] sm:$0xf]  ;;  %v1530_v19 = vor.u32 %v1899_v16, %v1527_v18  ;;  %v1517_v22 = vld [vmem:[#allocation5 + $0x180] sm:$0xf] }
  0x38   : > { %v1470_v57 = vor.u32 %v1886_v55, %v1469_v54  ;;  %v1518_v27 = vor.u32 %v1898_v24, %v1517_v22  ;;  %v1519_v30 = vld [vmem:[#allocation5 + $0x188] sm:$0xf0]  ;;  %v1691_v16 = vld [vmem:[#allocation5 + $0x2d0] sm:$0xf]  ;;  %v1941_v18 = vld [vmem:[#allocation5 + $0x2d4] sm:$0xf0] }
  0x39   : > { %v1693_v24 = vld [vmem:[#allocation5 + $0x2d8] sm:$0xf0]  ;;  %p69_p0 = scmp.ge.s32.totalorder %s72_s2, 32  }
  0x3a   :  { %s1280_s6 = sshll.u32 (%p69_p0), %s2310_s3, 4  ;;  %s2180_s7 = smov (%p69_p0), [#allocation8]   ;;  %s1281_s6 = int_to_ptr.hbm [resolvable:$true] %s1280_s6 }
  0x3b   : > { %611 = vmatpush.bf16.msra.mxu0 %v1502_v7  ;;  %625 = vmatpush.bf16.msra.mxu1 %v1566_v13  ;;  %v1884_v7 = vld [vmem:[#allocation5 + $0x114] sm:$0xf0]  ;;  %v1526_v13 = vor.u32 %v1900_v11, %v1525_v8  ;;  %v1942_v11 = vld [vmem:[#allocation5 + $0x2e4] sm:$0xf]  ;;  %s1278_s8 = sshll.u32 (%p69_p0), %s2180_s7, 4  ;;  %s1279_s8 = int_to_ptr.vmem [resolvable:$true] %s1278_s8 }
  0x3c   : > { %v1462_v12 = vor.u32 %v1884_v7, %v1461_v5  ;;  %v1926_v5 = vld [vmem:[#allocation5 + $0x264] sm:$0xf] }
  0x3f   : > { %612 = vmatpush.bf16.msra.mxu0 %v1494_v21  ;;  %626 = vmatpush.bf16.msra.mxu1 %v1558_v25  ;;  %v1882_v21 = vld [vmem:[#allocation5 + $0x104] sm:$0xf0]  ;;  %v1881_v25 = vld [vmem:[#allocation5 + $0x104] sm:$0xf] }
  0x40   : > { %v1454_v23 = vor.u32 %v1882_v21, %v1453_v20  ;;  %v1629_v20 = vld [vmem:[#allocation5 + $0x258] sm:$0xf0]  ;;  %v1692_v21 = vor.u32 %v1941_v18, %v1691_v16  ;;  %v1932_v16 = vld [vmem:[#allocation5 + $0x294] sm:$0xf] }
  0x43   : > { %613 = vmatpush.bf16.msra.mxu0 %v1486_v33  ;;  %627 = vmatpush.bf16.msra.mxu1 %v1550_v37 }
  0x93   : > { %v99_v45 = vpop.f32.mrf.mxu0  ;;  %v113_v46 = vpop.f32.mrf.mxu1 }
  0x9b   : > { %v101_v47 = vpop.f32.mrf.mxu0  ;;  %v115_v48 = vpop.f32.mrf.mxu1 }
  0x9c   : > { %v118_v49 = vpack.c.bf16 %v101_v47, %v99_v45  ;;  %v119_v50 = vpack.c.bf16 %v115_v48, %v113_v46  ;;  %v1478_v45 = vor.u32 %v1888_v43, %v1477_v42  ;;  %v1904_v46 = vld [vmem:[#allocation5 + $0x1b4] sm:$0xf0]  ;;  %v1887_v47 = vld [vmem:[#allocation5 + $0x134] sm:$0xf]  ;;  %v1479_v48 = vld [vmem:[#allocation5 + $0x138] sm:$0xf0] }
  0x9d   : > { %v1929_v42 = vld [vmem:[#allocation5 + $0x274] sm:$0xf0] }
  0x9e   : > { %320 = vmatmul.bf16.vlgmr.msra.gmra.mxu2 %v118_v49  ;;  %334 = vmatmul.bf16.vlgmr.msra.gmra.mxu3 %v119_v50 }
  0x9f   : > { %348 = vmatmul.bf16.vlgmr.msrb.gmra.mxu0 %v118_v49  ;;  %362 = vmatmul.bf16.vlgmr.msrb.gmra.mxu1 %v119_v50  ;;  %v1542_v49 = vor.u32 %v1904_v46, %v1541_v44  ;;  %v1482_v50 = vor.u32 %v1887_v47, %v1479_v48  ;;  %v1707_v44 = vld [vmem:[#allocation5 + $0x2f0] sm:$0xf] }
  0xa0   : > { %638 = vmatpush.bf16.msra.mxu2 %v1514_v60  ;;  %652 = vmatpush.bf16.msra.mxu3 %v1578_v63  ;;  %v1471_v60 = vld [vmem:[#allocation5 + $0x128] sm:$0xf0]  ;;  %v1901_v63 = vld [vmem:[#allocation5 + $0x1a4] sm:$0xf] }
  0xa1   : > { %614 = vmatpush.bf16.msra.mxu0 %v1478_v45  ;;  %628 = vmatpush.bf16.msra.mxu1 %v1542_v49  ;;  %v1474_v62 = vor.u32 %v1885_v59, %v1471_v60  ;;  %v1538_v6 = vor.u32 %v1901_v63, %v1535_v4  ;;  %v1945_v45 = vld [vmem:[#allocation5 + $0x2f4] sm:$0xf0]  ;;  %v1928_v49 = vld [vmem:[#allocation5 + $0x274] sm:$0xf]  ;;  %v1635_v60 = vld [vmem:[#allocation5 + $0x260] sm:$0xf] }
  0xa2   : > { %v1708_v46 = vor.u32 %v1945_v45, %v1707_v44  ;;  %v1913_v59 = vld [vmem:[#allocation2 + $0x10] sm:$0xff]  ;;  %v1943_v4 = vld [vmem:[#allocation5 + $0x2e4] sm:$0xf0]  ;;  %v1937_v45 = vld [vmem:[#allocation5 + $0x2b4] sm:$0xf0] }
  0xa4   : > { %639 = vmatpush.bf16.msra.mxu2 %v1506_v14  ;;  %653 = vmatpush.bf16.msra.mxu3 %v1570_v17  ;;  %v1883_v14 = vld [vmem:[#allocation5 + $0x114] sm:$0xf] }
  0xa5   : > { %615 = vmatpush.bf16.msra.mxu0 %v1470_v57  ;;  %629 = vmatpush.bf16.msra.mxu1 %v1534_v61  ;;  %v1466_v17 = vor.u32 %v1883_v14, %v1463_v15  ;;  %v1927_v61 = vld [vmem:[#allocation5 + $0x264] sm:$0xf0]  ;;  %v1627_v14 = vld [vmem:[#allocation5 + $0x250] sm:$0xf]  ;;  %v1925_v15 = vld [vmem:[#allocation5 + $0x254] sm:$0xf0] }
  0xa6   : > { %v1636_v63 = vor.u32 %v1927_v61, %v1635_v60 }
  0xa8   : > { %640 = vmatpush.bf16.msra.mxu2 %v1498_v26  ;;  %654 = vmatpush.bf16.msra.mxu3 %v1562_v29  ;;  %v1455_v26 = vld [vmem:[#allocation5 + $0x108] sm:$0xf0]  ;;  %v1897_v29 = vld [vmem:[#allocation5 + $0x184] sm:$0xf] }
  0xa9   : > { %616 = vmatpush.bf16.msra.mxu0 %v1462_v12  ;;  %630 = vmatpush.bf16.msra.mxu1 %v1526_v13  ;;  %v1458_v28 = vor.u32 %v1881_v25, %v1455_v26  ;;  %v1522_v31 = vor.u32 %v1897_v29, %v1519_v30  ;;  %v1701_v12 = vld [vmem:[#allocation5 + $0x2e8] sm:$0xf0]  ;;  %v1619_v26 = vld [vmem:[#allocation5 + $0x240] sm:$0xf]  ;;  %v1939_v30 = vld [vmem:[#allocation5 + $0x2c4] sm:$0xf0] }
  0xaa   : > { %v1704_v13 = vor.u32 %v1942_v11, %v1701_v12  ;;  %v1933_v11 = vld [vmem:[#allocation5 + $0x294] sm:$0xf0]  ;;  %v1916_v12 = vld [vmem:[#allocation5 + $0x214] sm:$0xf] }
  0xac   : > { %641 = vmatpush.bf16.msra.mxu2 %v1490_v38  ;;  %655 = vmatpush.bf16.msra.mxu3 %v1554_v41  ;;  %v1643_v41 = vld [vmem:[#allocation5 + $0x270] sm:$0xf] }
  0xad   : > { %617 = vmatpush.bf16.msra.mxu0 %v1454_v23  ;;  %631 = vmatpush.bf16.msra.mxu1 %v1518_v27  ;;  %v1644_v43 = vor.u32 %v1929_v42, %v1643_v41  ;;  %v1940_v23 = vld [vmem:[#allocation5 + $0x2d4] sm:$0xf]  ;;  %v1923_v27 = vld [vmem:[#allocation5 + $0x244] sm:$0xf0]  ;;  %v1611_v41 = vld [vmem:[#allocation5 + $0x230] sm:$0xf] }
  0xae   : > { %1449 = vmatmul.msk.bf16.vlgmr.msrb.gmra.mxu2 %vm86_vm0, %v1880_v51  ;;  %1450 = vmatmul.msk.bf16.vlgmr.msrb.gmra.mxu3 %vm86_vm0, %v1880_v51  ;;  %v1903_v51 = vld [vmem:[#allocation5 + $0x1b4] sm:$0xf]  ;;  %v1696_v25 = vor.u32 %v1940_v23, %v1693_v24  ;;  %v1620_v29 = vor.u32 %v1923_v27, %v1619_v26  ;;  %v1921_v42 = vld [vmem:[#allocation5 + $0x234] sm:$0xf0]  ;;  %v1931_v23 = vld [vmem:[#allocation5 + $0x284] sm:$0xf0] }
  0xaf   : > { %v1546_v53 = vor.u32 %v1903_v51, %v1543_v52  ;;  %v1944_v51 = vld [vmem:[#allocation5 + $0x2f4] sm:$0xf]  ;;  %v1709_v52 = vld [vmem:[#allocation5 + $0x2f8] sm:$0xf0]  ;;  %v1612_v44 = vor.u32 %v1921_v42, %v1611_v41  ;;  %v1914_v24 = vld [vmem:[#allocation5 + $0x204] sm:$0xf] }
  0xb0   : > { %642 = vmatpush.bf16.msra.mxu2 %v1482_v50  ;;  %v1645_v50 = vld [vmem:[#allocation5 + $0x278] sm:$0xf0]  ;;  %v1712_v58 = vor.u32 %v1944_v51, %v1709_v52 }
  0xb1   : > { %656 = vmatpush.bf16.msra.mxu3 %v1546_v53  ;;  %692 = vmatpush.bf16.msrb.mxu0 %v2240_v9  ;;  %v1648_v57 = vor.u32 %v1928_v49, %v1645_v50  ;;  %v1936_v50 = vld [vmem:[#allocation5 + $0x2b4] sm:$0xf]  ;;  %v1677_v51 = vld [vmem:[#allocation5 + $0x2b8] sm:$0xf0] }
  0xb2   : > { %706 = vmatpush.bf16.msrb.mxu1 %v2244_v10  ;;  %v1680_v52 = vor.u32 %v1936_v50, %v1677_v51 }
  0xb4   : > { %643 = vmatpush.bf16.msra.mxu2 %v1474_v62  ;;  %v1699_v62 = vld [vmem:[#allocation5 + $0x2e0] sm:$0xf] }
  0xb5   : > { %657 = vmatpush.bf16.msra.mxu3 %v1538_v6  ;;  %v1637_v6 = vld [vmem:[#allocation5 + $0x268] sm:$0xf0]  ;;  %v1700_v7 = vor.u32 %v1943_v4, %v1699_v62  ;;  %v1934_v62 = vld [vmem:[#allocation5 + $0x2a4] sm:$0xf] }
  0xb6   : > { %v1640_v8 = vor.u32 %v1926_v5, %v1637_v6  ;;  %v1595_v5 = vld [vmem:[#allocation5 + $0x210] sm:$0xf]  ;;  %v1917_v6 = vld [vmem:[#allocation5 + $0x214] sm:$0xf0] }
  0xb8   : > { %644 = vmatpush.bf16.msra.mxu2 %v1466_v17  ;;  %v1628_v17 = vor.u32 %v1925_v15, %v1627_v14 }
  0xb9   : > { %658 = vmatpush.bf16.msra.mxu3 %v1530_v19  ;;  %v1924_v19 = vld [vmem:[#allocation5 + $0x254] sm:$0xf] }
  0xba   : > { %v1632_v22 = vor.u32 %v1924_v19, %v1629_v20  ;;  %v1587_v19 = vld [vmem:[#allocation5 + $0x200] sm:$0xf]  ;;  %v1915_v20 = vld [vmem:[#allocation5 + $0x204] sm:$0xf0] }
  0xbc   : > { %645 = vmatpush.bf16.msra.mxu2 %v1458_v28  ;;  %v1683_v28 = vld [vmem:[#allocation5 + $0x2c0] sm:$0xf] }
  0xbd   : > { %659 = vmatpush.bf16.msra.mxu3 %v1522_v31  ;;  %v1922_v31 = vld [vmem:[#allocation5 + $0x244] sm:$0xf] }
  0xc0   : > { %908 = vmatpush.bf16.msrb.mxu2 %v1644_v43  ;;  %v1675_v43 = vld [vmem:[#allocation5 + $0x2b0] sm:$0xf] }
  0xc1   : > { %922 = vmatpush.bf16.msrb.mxu3 %v1708_v46  ;;  %v1920_v46 = vld [vmem:[#allocation5 + $0x234] sm:$0xf] }
  0xc4   : > { %909 = vmatpush.bf16.msrb.mxu2 %v1636_v63  ;;  %v1669_v63 = vld [vmem:[#allocation5 + $0x2a8] sm:$0xf0] }
  0xc5   : > { %923 = vmatpush.bf16.msrb.mxu3 %v1700_v7  ;;  %v1672_v4 = vor.u32 %v1934_v62, %v1669_v63  ;;  %v1659_v7 = vld [vmem:[#allocation5 + $0x290] sm:$0xf]  ;;  %v1779_v62 = vld [vmem:[#allocation5 + $0x378] sm:$0xf0] }
  0xc6   : > { %v1660_v14 = vor.u32 %v1933_v11, %v1659_v7  ;;  %v1960_v11 = vld [vmem:[#allocation5 + $0x364] sm:$0xf0] }
  0xc8   : > { %910 = vmatpush.bf16.msrb.mxu2 %v1628_v17  ;;  %v1661_v17 = vld [vmem:[#allocation5 + $0x298] sm:$0xf0] }
  0xc9   : > { %924 = vmatpush.bf16.msrb.mxu3 %v1692_v21  ;;  %v1664_v18 = vor.u32 %v1932_v16, %v1661_v17  ;;  %v1651_v21 = vld [vmem:[#allocation5 + $0x280] sm:$0xf]  ;;  %v1771_v16 = vld [vmem:[#allocation5 + $0x368] sm:$0xf0] }
  0xcc   : > { %911 = vmatpush.bf16.msrb.mxu2 %v1620_v29 }
  0xd0   : > { %912 = vmatpush.bf16.msrb.mxu2 %v1612_v44 }
 0x11c   : > { %v349_v32 = vpop.f32.mrf.mxu0  ;;  %v363_v33 = vpop.f32.mrf.mxu1 }
 0x11d   : > { %v2255_v34 = vadd.f32 %v363_v33, %v349_v32  ;;  %v1621_v32 = vld [vmem:[#allocation5 + $0x248] sm:$0xf0]  ;;  %v1684_v33 = vor.u32 %v1939_v30, %v1683_v28  ;;  %v1652_v28 = vor.u32 %v1931_v23, %v1651_v21  ;;  %v1930_v30 = vld [vmem:[#allocation5 + $0x284] sm:$0xf]  ;;  %v1958_v23 = vld [vmem:[#allocation5 + $0x354] sm:$0xf0] }
 0x11f   : > { %925 = vmatpush.bf16.msrb.mxu3 %v1684_v33 }
 0x121   : > { %v321_v35 = vpop.f32.mrf.mxu2  ;;  %v335_v36 = vpop.f32.mrf.mxu3 }
 0x122   : > { %v2258_v37 = vadd.f32 %v335_v36, %v321_v35  ;;  %v1624_v35 = vor.u32 %v1922_v31, %v1621_v32  ;;  %v1938_v36 = vld [vmem:[#allocation5 + $0x2c4] sm:$0xf]  ;;  %v1653_v31 = vld [vmem:[#allocation5 + $0x288] sm:$0xf0] }
 0x123   : > { %v1656_v32 = vor.u32 %v1930_v30, %v1653_v31  ;;  %v1763_v30 = vld [vmem:[#allocation5 + $0x358] sm:$0xf0] }
 0x124   : > { %v2264_v26 = vpop.f32.mrf.mxu0  ;;  %v2266_v27 = vpop.f32.mrf.mxu1  ;;  %v368_v33 = vmul.f32 0.03125, %v2258_v37 }
 0x129   : > { %v323_v38 = vpop.f32.mrf.mxu2  ;;  %v337_v39 = vpop.f32.mrf.mxu3 }
 0x12a   : > { %v2260_v40 = vadd.f32 %v337_v39, %v323_v38  ;;  %v1685_v38 = vld [vmem:[#allocation5 + $0x2c8] sm:$0xf0] }
 0x12b   : > { %v1688_v39 = vor.u32 %v1938_v36, %v1685_v38 }
 0x12c   : > { %v370_v44 = vmul.f32 0.03125, %v2260_v40 }
 0x12e   : > { %v374_v50 = vadd.f32 %v2157_v2, %v370_v44  ;;  %v1962_v2 = vld [vmem:[#allocation5 + $0x374] sm:$0xf0]  ;;  %v1972_v44 = vld [vmem:[#allocation5 + $0x3c4] sm:$0xf0] }
 0x131   : > { %v396_v47 = vpop.f32.mrf.mxu2  ;;  %v410_v48 = vpop.f32.mrf.mxu3 }
 0x139   : > { %v398_v53 = vpop.f32.mrf.mxu2  ;;  %v412_v54 = vpop.f32.mrf.mxu3 }
 0x13a   : > { %v415_v55 = vpack.c.bf16 %v398_v53, %v396_v47  ;;  %v416_v56 = vpack.c.bf16 %v412_v54, %v410_v48  ;;  %v1613_v47 = vld [vmem:[#allocation5 + $0x238] sm:$0xf0]  ;;  %v1676_v48 = vor.u32 %v1937_v45, %v1675_v43  ;;  %v1603_v53 = vld [vmem:[#allocation5 + $0x220] sm:$0xf]  ;;  %v1919_v54 = vld [vmem:[#allocation5 + $0x224] sm:$0xf0] }
 0x13b   : > { %v1616_v49 = vor.u32 %v1920_v46, %v1613_v47  ;;  %v369_v43 = vmul.f32 0.03125, %v2255_v34 }
 0x13c   : > { %618 = vmatmul.bf16.vlgmr.msra.gmra.mxu0 %v415_v55  ;;  %632 = vmatmul.bf16.vlgmr.msra.gmra.mxu1 %v416_v56 }
 0x13d   : > { %646 = vmatmul.bf16.vlgmr.msra.gmra.mxu2 %v415_v55  ;;  %660 = vmatmul.bf16.vlgmr.msra.gmra.mxu3 %v416_v56  ;;  %v1667_v55 = vld [vmem:[#allocation5 + $0x2a0] sm:$0xf]  ;;  %v1604_v56 = vor.u32 %v1919_v54, %v1603_v53  ;;  %v373_v37 = vadd.f32 %v2161_v1, %v369_v43  ;;  %v1777_v1 = vld [vmem:[#allocation5 + $0x370] sm:$0xf] }
 0x13e   : > { %936 = vmatpush.bf16.msra.mxu0 %v1648_v57  ;;  %950 = vmatpush.bf16.msra.mxu1 %v1712_v58  ;;  %v1935_v57 = vld [vmem:[#allocation5 + $0x2a4] sm:$0xf0]  ;;  %v1918_v58 = vld [vmem:[#allocation5 + $0x224] sm:$0xf] }
 0x13f   : > { %926 = vmatpush.bf16.msrb.mxu3 %v1676_v48  ;;  %v1668_v60 = vor.u32 %v1935_v57, %v1667_v55  ;;  %913 = vmatpush.bf16.msrb.mxu2 %v1604_v56  ;;  %v1946_v57 = vld [vmem:[#allocation2 + $0x18] sm:$0xff] }
 0x142   : > { %937 = vmatpush.bf16.msra.mxu0 %v1640_v8  ;;  %951 = vmatpush.bf16.msra.mxu1 %v1704_v13  ;;  %v1596_v8 = vor.u32 %v1917_v6, %v1595_v5  ;;  %v1597_v13 = vld [vmem:[#allocation5 + $0x218] sm:$0xf0]  ;;  %v1977_v5 = vld [vmem:[#allocation5 + $0x3f4] sm:$0xf] }
 0x143   : > { %927 = vmatpush.bf16.msrb.mxu3 %v1668_v60  ;;  %v1600_v15 = vor.u32 %v1916_v12, %v1597_v13  ;;  %v1978_v60 = vld [vmem:[#allocation5 + $0x3f4] sm:$0xf0]  ;;  %v1843_v6 = vld [vmem:[#allocation5 + $0x3f8] sm:$0xf0]  ;;  %v1833_v12 = vld [vmem:[#allocation5 + $0x3e0] sm:$0xf] }
 0x144   : > { %914 = vmatpush.bf16.msrb.mxu2 %v1596_v8  ;;  %v1846_v7 = vor.u32 %v1977_v5, %v1843_v6  ;;  %v1769_v8 = vld [vmem:[#allocation5 + $0x360] sm:$0xf] }
 0x145   : > { %v1770_v13 = vor.u32 %v1960_v11, %v1769_v8  ;;  %v1803_v8 = vld [vmem:[#allocation5 + $0x3a8] sm:$0xf0]  ;;  %v1729_v11 = vld [vmem:[#allocation5 + $0x310] sm:$0xf] }
 0x146   : > { %938 = vmatpush.bf16.msra.mxu0 %v1632_v22  ;;  %952 = vmatpush.bf16.msra.mxu1 %v1696_v25  ;;  %v1588_v22 = vor.u32 %v1915_v20, %v1587_v19  ;;  %v1589_v25 = vld [vmem:[#allocation5 + $0x208] sm:$0xf0]  ;;  %v1975_v19 = vld [vmem:[#allocation5 + $0x3e4] sm:$0xf] }
 0x147   : > { %928 = vmatpush.bf16.msrb.mxu3 %v1660_v14  ;;  %v1592_v29 = vor.u32 %v1914_v24, %v1589_v25  ;;  %v1976_v14 = vld [vmem:[#allocation5 + $0x3e4] sm:$0xf0]  ;;  %v1835_v20 = vld [vmem:[#allocation5 + $0x3e8] sm:$0xf0]  ;;  %v1825_v24 = vld [vmem:[#allocation5 + $0x3d0] sm:$0xf] }
 0x148   : > { %915 = vmatpush.bf16.msrb.mxu2 %v1588_v22  ;;  %v1834_v17 = vor.u32 %v1976_v14, %v1833_v12  ;;  %v1838_v21 = vor.u32 %v1975_v19, %v1835_v20  ;;  %v1761_v22 = vld [vmem:[#allocation5 + $0x350] sm:$0xf]  ;;  %v1731_v19 = vld [vmem:[#allocation5 + $0x318] sm:$0xf0]  ;;  %v1965_v20 = vld [vmem:[#allocation5 + $0x394] sm:$0xf] }
 0x149   : > { %v1762_v25 = vor.u32 %v1958_v23, %v1761_v22  ;;  %v1793_v14 = vld [vmem:[#allocation5 + $0x390] sm:$0xf]  ;;  %v1795_v22 = vld [vmem:[#allocation5 + $0x398] sm:$0xf0] }
 0x14a   : > { %939 = vmatpush.bf16.msra.mxu0 %v1624_v35  ;;  %953 = vmatpush.bf16.msra.mxu1 %v1688_v39  ;;  %v372_v39 = vadd.f32 %v2165_v0, %v368_v33  ;;  %v1973_v33 = vld [vmem:[#allocation5 + $0x3d4] sm:$0xf]  ;;  %v1798_v23 = vor.u32 %v1965_v20, %v1795_v22 }
 0x14b   : > { %929 = vmatpush.bf16.msrb.mxu3 %v1652_v28  ;;  %v1974_v28 = vld [vmem:[#allocation5 + $0x3d4] sm:$0xf0] }
 0x14c   : > { %1583 = vmatmul.msk.bf16.vlgmr.msrb.gmra.mxu0 %vm86_vm0, %v1913_v59  ;;  %1584 = vmatmul.msk.bf16.vlgmr.msrb.gmra.mxu1 %vm86_vm0, %v1913_v59  ;;  %v1605_v59 = vld [vmem:[#allocation5 + $0x228] sm:$0xf0]  ;;  %v1826_v31 = vor.u32 %v1974_v28, %v1825_v24  ;;  %v1721_v24 = vld [vmem:[#allocation5 + $0x300] sm:$0xf] }
 0x14d   : > { %v1608_v61 = vor.u32 %v1918_v58, %v1605_v59  ;;  %990 = vmatpush.bf16.msra.mxu2 %v2240_v9  ;;  %v1841_v58 = vld [vmem:[#allocation5 + $0x3f0] sm:$0xf]  ;;  %v1778_v59 = vor.u32 %v1962_v2, %v1777_v1  ;;  %v1811_v1 = vld [vmem:[#allocation5 + $0x3b8] sm:$0xf0]  ;;  %v1785_v28 = vld [vmem:[#allocation5 + $0x380] sm:$0xf] }
 0x14e   : > { %940 = vmatpush.bf16.msra.mxu0 %v1616_v49  ;;  %954 = vmatpush.bf16.msra.mxu1 %v1680_v52  ;;  %v1842_v63 = vor.u32 %v1978_v60, %v1841_v58  ;;  %v1737_v58 = vld [vmem:[#allocation5 + $0x320] sm:$0xf] }
 0x14f   : > { %1004 = vmatpush.bf16.msra.mxu3 %v2244_v10  ;;  %v1801_v60 = vld [vmem:[#allocation5 + $0x3a0] sm:$0xf] }
 0x152   : > { %941 = vmatpush.bf16.msra.mxu0 %v1608_v61  ;;  %955 = vmatpush.bf16.msra.mxu1 %v1672_v4  ;;  %v1961_v61 = vld [vmem:[#allocation5 + $0x374] sm:$0xf] }
 0x153   : > { %v1782_v4 = vor.u32 %v1961_v61, %v1779_v62  ;;  %v1968_v62 = vld [vmem:[#allocation5 + $0x3a4] sm:$0xf0] }
 0x154   : > { %v1802_v5 = vor.u32 %v1968_v62, %v1801_v60  ;;  %v366_v62 = vadd.f32 %v2266_v27, %v2264_v26 }
 0x156   : > { %942 = vmatpush.bf16.msra.mxu0 %v1600_v15  ;;  %956 = vmatpush.bf16.msra.mxu1 %v1664_v18  ;;  %v1959_v15 = vld [vmem:[#allocation5 + $0x364] sm:$0xf] }
 0x157   : > { %v1774_v18 = vor.u32 %v1959_v15, %v1771_v16  ;;  %v1966_v15 = vld [vmem:[#allocation5 + $0x394] sm:$0xf0] }
 0x15a   : > { %943 = vmatpush.bf16.msra.mxu0 %v1592_v29  ;;  %957 = vmatpush.bf16.msra.mxu1 %v1656_v32  ;;  %v1957_v29 = vld [vmem:[#allocation5 + $0x354] sm:$0xf] }
 0x15b   : > { %v1766_v32 = vor.u32 %v1957_v29, %v1763_v30  ;;  %v1964_v30 = vld [vmem:[#allocation5 + $0x384] sm:$0xf0] }
 0x15e   : > { %1206 = vmatpush.bf16.msrb.mxu0 %v1778_v59  ;;  %1220 = vmatpush.bf16.msrb.mxu1 %v1842_v63  ;;  %v1952_v59 = vld [vmem:[#allocation5 + $0x324] sm:$0xf0]  ;;  %v1951_v63 = vld [vmem:[#allocation5 + $0x324] sm:$0xf] }
 0x15f   : > { %v1738_v61 = vor.u32 %v1952_v59, %v1737_v58 }
 0x162   : > { %1207 = vmatpush.bf16.msrb.mxu0 %v1770_v13  ;;  %1221 = vmatpush.bf16.msrb.mxu1 %v1834_v17  ;;  %v1950_v13 = vld [vmem:[#allocation5 + $0x314] sm:$0xf0]  ;;  %v1794_v17 = vor.u32 %v1966_v15, %v1793_v14 }
 0x163   : > { %v1730_v16 = vor.u32 %v1950_v13, %v1729_v11  ;;  %v371_v13 = vmul.f32 0.03125, %v366_v62 }
 0x166   : > { %1208 = vmatpush.bf16.msrb.mxu0 %v1762_v25  ;;  %1222 = vmatpush.bf16.msrb.mxu1 %v1826_v31  ;;  %v1948_v25 = vld [vmem:[#allocation5 + $0x304] sm:$0xf0]  ;;  %v1947_v31 = vld [vmem:[#allocation5 + $0x304] sm:$0xf] }
 0x167   : > { %v1722_v29 = vor.u32 %v1948_v25, %v1721_v24 }
 0x1b9   : > { %v619_v35 = vpop.f32.mrf.mxu0  ;;  %v633_v36 = vpop.f32.mrf.mxu1 }
 0x1ba   : > { %v634_v38 = vadd.f32 %v633_v36, %v619_v35  ;;  %v1827_v35 = vld [vmem:[#allocation5 + $0x3d8] sm:$0xf0] }
 0x1bb   : > { %v1830_v36 = vor.u32 %v1973_v33, %v1827_v35 }
 0x1bc   : > { %v666_v41 = vmul.f32 0.00048828125, %v634_v38  ;;  %v1753_v38 = vld [vmem:[#allocation5 + $0x340] sm:$0xf] }
 0x1be   : > { %v2272_v42 = vadd.f32 %v666_v41, %v372_v39  ;;  %v1956_v39 = vld [vmem:[#allocation5 + $0x344] sm:$0xf0]  ;;  %v1817_v41 = vld [vmem:[#allocation5 + $0x3c0] sm:$0xf] }
 0x1bf   : > { %v1754_v43 = vor.u32 %v1956_v39, %v1753_v38  ;;  %v1963_v39 = vld [vmem:[#allocation5 + $0x384] sm:$0xf] }
 0x1c0   : > { %v647_v45 = vpop.f32.mrf.mxu2  ;;  %v661_v46 = vpop.f32.mrf.mxu3 }
 0x1c1   : > { %v662_v47 = vadd.f32 %v661_v46, %v647_v45  ;;  %v621_v9 = vpop.f32.mrf.mxu0  ;;  %v635_v48 = vpop.f32.mrf.mxu1  ;;  %v1955_v45 = vld [vmem:[#allocation5 + $0x344] sm:$0xf]  ;;  %v1755_v46 = vld [vmem:[#allocation5 + $0x348] sm:$0xf0]  ;;  %1209 = vmatpush.bf16.msrb.mxu0 %v1754_v43 }
 0x1c2   : > { %v636_v10 = vadd.f32 %v635_v48, %v621_v9  ;;  %v1758_v9 = vor.u32 %v1955_v45, %v1755_v46  ;;  %v1971_v48 = vld [vmem:[#allocation5 + $0x3c4] sm:$0xf] }
 0x1c3   : > { %v667_v49 = vmul.f32 0.00048828125, %v662_v47  ;;  %v1818_v47 = vor.u32 %v1972_v44, %v1817_v41  ;;  %v1787_v41 = vld [vmem:[#allocation5 + $0x388] sm:$0xf0] }
 0x1c4   : > { %v668_v51 = vmul.f32 0.00048828125, %v636_v10  ;;  %v1819_v10 = vld [vmem:[#allocation5 + $0x3c8] sm:$0xf0]  ;;  %v1790_v43 = vor.u32 %v1963_v39, %v1787_v41 }
 0x1c5   : > { %v2278_v0 = vadd.f32 %v667_v49, %v373_v37  ;;  %v1822_v37 = vor.u32 %v1971_v48, %v1819_v10  ;;  %1223 = vmatpush.bf16.msrb.mxu1 %v1818_v47  ;;  %v1745_v49 = vld [vmem:[#allocation5 + $0x330] sm:$0xf] }
 0x1c6   : > { %v2280_v52 = vadd.f32 %v668_v51, %v374_v50  ;;  %v1954_v50 = vld [vmem:[#allocation5 + $0x334] sm:$0xf0]  ;;  %v1809_v51 = vld [vmem:[#allocation5 + $0x3b0] sm:$0xf] }
 0x1c8   : > { %v649_v33 = vpop.f32.mrf.mxu2  ;;  %v663_v35 = vpop.f32.mrf.mxu3 }
 0x1c9   : > { %v694_v53 = vpop.f32.mrf.mxu0  ;;  %v708_v34 = vpop.f32.mrf.mxu1 }
 0x1d1   : > { %v696_v54 = vpop.f32.mrf.mxu0  ;;  %v710_v40 = vpop.f32.mrf.mxu1 }
 0x1d2   : > { %v713_v55 = vpack.c.bf16 %v696_v54, %v694_v53  ;;  %v714_v56 = vpack.c.bf16 %v710_v40, %v708_v34  ;;  %v1746_v53 = vor.u32 %v1954_v50, %v1745_v49  ;;  %v1970_v34 = vld [vmem:[#allocation5 + $0x3b4] sm:$0xf0]  ;;  %v1953_v54 = vld [vmem:[#allocation5 + $0x334] sm:$0xf]  ;;  %v1747_v40 = vld [vmem:[#allocation5 + $0x338] sm:$0xf0] }
 0x1d4   : > { %916 = vmatmul.bf16.vlgmr.msrb.gmra.mxu2 %v713_v55  ;;  %930 = vmatmul.bf16.vlgmr.msrb.gmra.mxu3 %v714_v56 }
 0x1d5   : > { %944 = vmatmul.bf16.vlgmr.msra.gmra.mxu0 %v713_v55  ;;  %958 = vmatmul.bf16.vlgmr.msra.gmra.mxu1 %v714_v56  ;;  %v1810_v55 = vor.u32 %v1970_v34, %v1809_v51  ;;  %v1750_v56 = vor.u32 %v1953_v54, %v1747_v40 }
 0x1d6   : > { %1234 = vmatpush.bf16.msrb.mxu2 %v1782_v4  ;;  %1248 = vmatpush.bf16.msrb.mxu3 %v1846_v7  ;;  %v1739_v4 = vld [vmem:[#allocation5 + $0x328] sm:$0xf0]  ;;  %v1967_v7 = vld [vmem:[#allocation5 + $0x3a4] sm:$0xf] }
 0x1d7   : > { %1210 = vmatpush.bf16.msrb.mxu0 %v1746_v53  ;;  %1224 = vmatpush.bf16.msrb.mxu1 %v1810_v55  ;;  %v1742_v6 = vor.u32 %v1951_v63, %v1739_v4  ;;  %v1806_v12 = vor.u32 %v1967_v7, %v1803_v8 }
 0x1da   : > { %1235 = vmatpush.bf16.msrb.mxu2 %v1774_v18  ;;  %1249 = vmatpush.bf16.msrb.mxu3 %v1838_v21  ;;  %v1949_v18 = vld [vmem:[#allocation5 + $0x314] sm:$0xf] }
 0x1db   : > { %1211 = vmatpush.bf16.msrb.mxu0 %v1738_v61  ;;  %1225 = vmatpush.bf16.msrb.mxu1 %v1802_v5  ;;  %v1734_v21 = vor.u32 %v1949_v18, %v1731_v19 }
 0x1de   : > { %1236 = vmatpush.bf16.msrb.mxu2 %v1766_v32  ;;  %1250 = vmatpush.bf16.msrb.mxu3 %v1830_v36  ;;  %v1723_v32 = vld [vmem:[#allocation5 + $0x308] sm:$0xf0]  ;;  %v1786_v36 = vor.u32 %v1964_v30, %v1785_v28 }
 0x1df   : > { %1212 = vmatpush.bf16.msrb.mxu0 %v1730_v16  ;;  %1226 = vmatpush.bf16.msrb.mxu1 %v1794_v17  ;;  %v1726_v38 = vor.u32 %v1947_v31, %v1723_v32 }
 0x1e2   : > { %1237 = vmatpush.bf16.msrb.mxu2 %v1758_v9  ;;  %1251 = vmatpush.bf16.msrb.mxu3 %v1822_v37 }
 0x1e3   : > { %1213 = vmatpush.bf16.msrb.mxu0 %v1722_v29  ;;  %1227 = vmatpush.bf16.msrb.mxu1 %v1786_v36 }
 0x1e4   : > { %1717 = vmatmul.msk.bf16.vlgmr.msra.gmra.mxu2 %vm86_vm0, %v1946_v57  ;;  %1718 = vmatmul.msk.bf16.vlgmr.msra.gmra.mxu3 %vm86_vm0, %v1946_v57  ;;  %v1969_v57 = vld [vmem:[#allocation5 + $0x3b4] sm:$0xf] }
 0x1e5   : > { %v1814_v2 = vor.u32 %v1969_v57, %v1811_v1 }
 0x1e6   : > { %1238 = vmatpush.bf16.msrb.mxu2 %v1750_v56 }
 0x1e7   : > { %1252 = vmatpush.bf16.msrb.mxu3 %v1814_v2 }
 0x1ea   : > { %1239 = vmatpush.bf16.msrb.mxu2 %v1742_v6  ;;  %v664_v6 = vadd.f32 %v663_v35, %v649_v33 }
 0x1eb   : > { %1253 = vmatpush.bf16.msrb.mxu3 %v1806_v12 }
 0x1ec   : > { %v669_v18 = vmul.f32 0.00048828125, %v664_v6 }
 0x1ee   : > { %1240 = vmatpush.bf16.msrb.mxu2 %v1734_v21  ;;  %v375_v21 = vadd.f32 %v2153_v3, %v371_v13 }
 0x1ef   : > { %1254 = vmatpush.bf16.msrb.mxu3 %v1798_v23 }
 0x1f0   : > { %v673_v23 = vadd.f32 %v669_v18, %v375_v21 }
 0x1f2   : > { %1241 = vmatpush.bf16.msrb.mxu2 %v1726_v38 }
 0x1f3   : > { %1255 = vmatpush.bf16.msrb.mxu3 %v1790_v43 }
 0x252   : > { %v945_v56 = vpop.f32.mrf.mxu0  ;;  %v959_v57 = vpop.f32.mrf.mxu1 }
 0x253   : > { %v960_v60 = vadd.f32 %v959_v57, %v945_v56 }
 0x255   : > { %v965_v63 = vmul.f32 5.086263e-06, %v960_v60 }
 0x257   : > { %v917_v44 = vpop.f32.mrf.mxu2  ;;  %v931_v45 = vpop.f32.mrf.mxu3  ;;  %v969_v14 = vadd.f32 %v965_v63, %v2278_v0 }
 0x258   : > { %v932_v46 = vadd.f32 %v931_v45, %v917_v44 }
 0x25a   : > { %v964_v47 = vmul.f32 5.086263e-06, %v932_v46  ;;  %v947_v1 = vpop.f32.mrf.mxu0 }
 0x25c   : > { %v968_v9 = vadd.f32 %v964_v47, %v2272_v42  ;;  %v961_v42 = vpop.f32.mrf.mxu1 }
 0x25d   : > { %v962_v15 = vadd.f32 %v961_v42, %v947_v1 }
 0x25f   : > { %v919_v48 = vpop.f32.mrf.mxu2  ;;  %v933_v10 = vpop.f32.mrf.mxu3  ;;  %v967_v26 = vmul.f32 5.086263e-06, %v962_v15 }
 0x260   : > { %v934_v37 = vadd.f32 %v933_v10, %v919_v48 }
 0x261   : > { %v971_v25 = vadd.f32 %v967_v26, %v673_v23 }
 0x262   : > { %v966_v49 = vmul.f32 5.086263e-06, %v934_v37 }
 0x264   : > { %v970_v50 = vadd.f32 %v966_v49, %v2280_v52 }
 0x267   : > { %v992_v51 = vpop.f32.mrf.mxu2  ;;  %v1006_v53 = vpop.f32.mrf.mxu3 }
 0x26f   : > { %v994_v34 = vpop.f32.mrf.mxu2  ;;  %v1008_v54 = vpop.f32.mrf.mxu3 }
 0x270   : > { %v1011_v40 = vpack.c.bf16 %v994_v34, %v992_v51  ;;  %v1012_v55 = vpack.c.bf16 %v1008_v54, %v1006_v53 }
 0x272   : > { %1214 = vmatmul.bf16.vlgmr.msrb.gmra.mxu0 %v1011_v40  ;;  %1228 = vmatmul.bf16.vlgmr.msrb.gmra.mxu1 %v1012_v55 }
 0x273   : > { %1242 = vmatmul.bf16.vlgmr.msrb.gmra.mxu2 %v1011_v40  ;;  %1256 = vmatmul.bf16.vlgmr.msrb.gmra.mxu3 %v1012_v55 }
 0x2ef   : > { %v1215_v2 = vpop.f32.mrf.mxu0  ;;  %v1229_v58 = vpop.f32.mrf.mxu1 }
 0x2f0   : > { %v1230_v59 = vadd.f32 %v1229_v58, %v1215_v2 }
 0x2f2   : > { %v1262_v61 = vmul.f32 3.973643e-08, %v1230_v59 }
 0x2f4   : > { %v1266_v52 = vadd.f32 %v1262_v61, %v968_v9  }
 0x2f6   : > { %v1243_v4 = vpop.f32.mrf.mxu2  ;;  %v1257_v5 = vpop.f32.mrf.mxu3  ;;  %v2314_v0 = vmov %v1266_v52  ;;  %1270 = vst [vmem:[#allocation8] sm:$0xff] (%p69_p0), %v1266_v52 }
 0x2f7   : > { %v1258_v7 = vadd.f32 %v1257_v5, %v1243_v4  ;;  %v1217_v8 = vpop.f32.mrf.mxu0  ;;  %v1231_v11 = vpop.f32.mrf.mxu1 }
 0x2f8   : > { %v1232_v12 = vadd.f32 %v1231_v11, %v1217_v8 }
 0x2f9   : > { %v1263_v16 = vmul.f32 3.973643e-08, %v1258_v7 }
 0x2fa   : > { %v1264_v17 = vmul.f32 3.973643e-08, %v1232_v12 }
 0x2fb   : > { %v1267_v19 = vadd.f32 %v1263_v16, %v969_v14  }
 0x2fc   : > { %v1268_v20 = vadd.f32 %v1264_v17, %v970_v50  }
 0x2fd   : > { %v2313_v1 = vmov %v1267_v19  ;;  %1271 = vst [vmem:[#allocation8 + $0x8] sm:$0xff] (%p69_p0), %v1267_v19 }
 0x2fe   : > { %v1245_v27 = vpop.f32.mrf.mxu2  ;;  %v1259_v22 = vpop.f32.mrf.mxu3  ;;  %v2312_v2 = vmov %v1268_v20  ;;  %1272 = vst [vmem:[#allocation8 + $0x10] sm:$0xff] (%p69_p0), %v1268_v20 }
 0x2ff   : > { %v1260_v24 = vadd.f32 %v1259_v22, %v1245_v27 }
 0x301   : > { %v1265_v28 = vmul.f32 3.973643e-08, %v1260_v24  ;;  %71 = sbr.rel (!%p69_p0) target bundleno = 17 (0x11), region = 57 }
 0x303   : > { %v1269_v29 = vadd.f32 %v1265_v28, %v971_v25  }
 0x305   : > { %v2311_v3 = vmov %v1269_v29  ;;  %1273 = vst [vmem:[#allocation8 + $0x18] sm:$0xff] (%p69_p0), %v1269_v29 }
 0x306   :  { %1286 = dma.vmem_to_hbm [thread:$0]  %s1279_s8, 512, %s1281_s6, [#allocation4], %s2178_s30, %s2178_s30, %s2179_s0  }
 0x307   :  { %2149 = dma.done.wait [#allocation4], 512  }
 0x308   :  { %2150 = vsyncadd [#allocation4], 4294966784 }
 0x309   :  { %1291 = vsyncpa [#allocation3], 1 }
 0x30a   :  { %1292 = vsyncpa [#allocation6], 1 }
 0x30b   :  { %1293 = vsyncpa [#allocation4], 1 }

// kernel: tpu_custom_call.1
= control target key start
LH: loop header
LB: loop body
LE: loop exit
PB: predicated region body
PF: predicated region fallthrough
CT: control target
= control target key end

     0   :  { %8 = vsyncpa [#allocation3], 0  ;;  %s2307_s0 = inlined_call_operand.hbm [shape: bf16[4,16,16], index: 0, kind: input, shape index: {}]   ;;  %s2308_s1 = inlined_call_operand.hbm [shape: bf16[4,256,256], index: 1, kind: input, shape index: {}]   ;;  %s2309_s2 = inlined_call_operand.hbm [shape: f32[1,16,256], index: 2, kind: input, shape index: {}]   ;;  %s2310_s3 = inlined_call_operand.hbm [shape: f32[1,16,256], index: 3, kind: output, shape index: {}]  }
   0x1   :  { %9 = vsyncpa [#allocation6], 0  ;;  %s28_s14 = sshll.u32 %s2308_s1, 4  ;;  %s29_s14 = int_to_ptr.hbm [resolvable:$true] %s28_s14 }
   0x2   :  { %10 = vsyncpa [#allocation4], 0  ;;  %s2171_s15 = smov [#allocation5]   ;;  %s15_s19 = sshll.u32 %s2307_s0, 4  ;;  %s16_s19 = int_to_ptr.hbm [resolvable:$true] %s15_s19 }
   0x3   :  { %s30_s16 = sshll.u32 %s2171_s15, 4  ;;  %s2172_s20 = smov 128   ;;  %s31_s16 = int_to_ptr.vmem [resolvable:$true] %s30_s16 }
   0x4   :  { %s2173_s21 = smov 8   ;;  %s2174_s22 = smov [#allocation2]  }
   0x5   :  { %36 = dma.hbm_to_vmem [thread:$0]  %s29_s14, 16384, %s31_s16, [#allocation6], %s2172_s20, %s2172_s20, %s2173_s21  }
   0x6   :  { %s17_s23 = sshll.u32 %s2174_s22, 4  ;;  %s2175_s24 = smov 64   ;;  %s18_s23 = int_to_ptr.vmem [resolvable:$true] %s17_s23 }
   0x7   :  { %s2176_s25 = smov 4   ;;  %s41_s27 = sshll.u32 %s2309_s2, 4  ;;  %s42_s27 = int_to_ptr.hbm [resolvable:$true] %s41_s27 }
   0x8   :  { %23 = dma.hbm_to_vmem [thread:$0]  %s16_s19, 512, %s18_s23, [#allocation3], %s2175_s24, %s2175_s24, %s2176_s25  }
   0x9   :  { %s2177_s28 = smov [#allocation7]   ;;  %s2178_s30 = smov 256  }
   0xa   :  { %s43_s29 = sshll.u32 %s2177_s28, 4  ;;  %s2179_s0 = smov 16   ;;  %s44_s29 = int_to_ptr.vmem [resolvable:$true] %s43_s29 }
   0xb   :  { %49 = dma.hbm_to_vmem [thread:$0]  %s42_s27, 512, %s44_s29, [#allocation6], %s2178_s30, %s2178_s30, %s2179_s0  }
   0xc   :  { %2145 = dma.done.wait [#allocation3], 512  }
   0xd   :  { %2146 = vsyncadd [#allocation3], 4294966784 }
   0xe   :  { %2147 = dma.done.wait [#allocation6], 16896  }
   0xf   :  { %2148 = vsyncadd [#allocation6], 4294950400  ;;  %v63_v0 = vld [vmem:[#allocation7] sm:$0xff]   ;;  %v64_v1 = vld [vmem:[#allocation7 + $0x8] sm:$0xff]   ;;  %s2221_s2 = smov 0  }
  0x10   :  { %v65_v2 = vld [vmem:[#allocation7 + $0x10] sm:$0xff]   ;;  %v66_v3 = vld [vmem:[#allocation7 + $0x18] sm:$0xff]  }
  0x11 LB: > { %v1375_v4 = vld [vmem:[#allocation5 + $0x70] sm:$0xf]  ;;  %v1863_v5 = vld [vmem:[#allocation5 + $0x74] sm:$0xf0]  ;;  %v1862_v8 = vld [vmem:[#allocation5 + $0x74] sm:$0xf]  ;;  %v2240_v9 = vpack.c.bf16 %v2157_v2, %v2165_v0  ;;  %v2244_v10 = vpack.c.bf16 %v2153_v3, %v2161_v1  ;;  %s2169_s2 = sphi %s2221_s2, %s72_s2   ;;  %v2165_v0 = vphi %v63_v0, %v2314_v0   ;;  %v2161_v1 = vphi %v64_v1, %v2313_v1   ;;  %v2157_v2 = vphi %v65_v2, %v2312_v2   ;;  %v2153_v3 = vphi %v66_v3, %v2311_v3  }
  0x12   : > { %v1439_v6 = vld [vmem:[#allocation5 + $0xf0] sm:$0xf]  ;;  %v1879_v7 = vld [vmem:[#allocation5 + $0xf4] sm:$0xf0]  ;;  %v1847_v11 = vld [vmem:[#allocation2] sm:$0xff]  ;;  %vm86_vm0 = vcmask 130048   ;;  %v1376_v12 = vor.u32 %v1863_v5, %v1375_v4 }
  0x13   : > { %v1377_v13 = vld [vmem:[#allocation5 + $0x78] sm:$0xf0]  ;;  %v1878_v14 = vld [vmem:[#allocation5 + $0xf4] sm:$0xf]  ;;  %v1440_v15 = vor.u32 %v1879_v7, %v1439_v6  ;;  %v1367_v18 = vld [vmem:[#allocation5 + $0x60] sm:$0xf]  ;;  %97 = vmatpush.bf16.msra.mxu0 %v2240_v9  ;;  %111 = vmatpush.bf16.msra.mxu1 %v2244_v10 }
  0x14   : > { %v1380_v16 = vor.u32 %v1862_v8, %v1377_v13  ;;  %v1441_v17 = vld [vmem:[#allocation5 + $0xf8] sm:$0xf0]  ;;  %v1861_v19 = vld [vmem:[#allocation5 + $0x64] sm:$0xf0]  ;;  %v1431_v21 = vld [vmem:[#allocation5 + $0xe0] sm:$0xf]  ;;  %312 = vmatpush.bf16.msra.mxu2 %v1376_v12 }
  0x15   : > { %v1444_v20 = vor.u32 %v1878_v14, %v1441_v17  ;;  %v1877_v22 = vld [vmem:[#allocation5 + $0xe4] sm:$0xf0]  ;;  %v1860_v23 = vld [vmem:[#allocation5 + $0x64] sm:$0xf]  ;;  %326 = vmatpush.bf16.msra.mxu3 %v1440_v15  ;;  %v1368_v24 = vor.u32 %v1861_v19, %v1367_v18  ;;  %v1369_v26 = vld [vmem:[#allocation5 + $0x68] sm:$0xf0] }
  0x16   : > { %v1432_v25 = vor.u32 %v1877_v22, %v1431_v21  ;;  %v1876_v27 = vld [vmem:[#allocation5 + $0xe4] sm:$0xf]  ;;  %v1433_v28 = vld [vmem:[#allocation5 + $0xe8] sm:$0xf0]  ;;  %v1372_v29 = vor.u32 %v1860_v23, %v1369_v26  ;;  %v1359_v31 = vld [vmem:[#allocation5 + $0x50] sm:$0xf]  ;;  %1315 = vmatmul.msk.bf16.vlgmr.msra.gmra.mxu0 %vm86_vm0, %v1847_v11  ;;  %1316 = vmatmul.msk.bf16.vlgmr.msra.gmra.mxu1 %vm86_vm0, %v1847_v11 }
  0x17   : > { %340 = vmatpush.bf16.msrb.mxu0 %v1380_v16  ;;  %354 = vmatpush.bf16.msrb.mxu1 %v1444_v20  ;;  %v1436_v30 = vor.u32 %v1876_v27, %v1433_v28  ;;  %v1859_v32 = vld [vmem:[#allocation5 + $0x54] sm:$0xf0]  ;;  %v1423_v33 = vld [vmem:[#allocation5 + $0xd0] sm:$0xf]  ;;  %v1858_v35 = vld [vmem:[#allocation5 + $0x54] sm:$0xf] }
  0x18   : > { %v1875_v34 = vld [vmem:[#allocation5 + $0xd4] sm:$0xf0]  ;;  %v1361_v36 = vld [vmem:[#allocation5 + $0x58] sm:$0xf0]  ;;  %v1874_v37 = vld [vmem:[#allocation5 + $0xd4] sm:$0xf]  ;;  %313 = vmatpush.bf16.msra.mxu2 %v1368_v24  ;;  %v1360_v39 = vor.u32 %v1859_v32, %v1359_v31 }
  0x19   : > { %v1425_v38 = vld [vmem:[#allocation5 + $0xd8] sm:$0xf0]  ;;  %327 = vmatpush.bf16.msra.mxu3 %v1432_v25  ;;  %v1424_v40 = vor.u32 %v1875_v34, %v1423_v33  ;;  %v1351_v41 = vld [vmem:[#allocation5 + $0x40] sm:$0xf]  ;;  %v1857_v42 = vld [vmem:[#allocation5 + $0x44] sm:$0xf0]  ;;  %v1364_v43 = vor.u32 %v1858_v35, %v1361_v36 }
  0x1a   : > { %v1428_v44 = vor.u32 %v1874_v37, %v1425_v38  ;;  %v1415_v45 = vld [vmem:[#allocation5 + $0xc0] sm:$0xf]  ;;  %v1873_v46 = vld [vmem:[#allocation5 + $0xc4] sm:$0xf0]  ;;  %v1856_v47 = vld [vmem:[#allocation5 + $0x44] sm:$0xf]  ;;  %v1352_v51 = vor.u32 %v1857_v42, %v1351_v41 }
  0x1b   : > { %341 = vmatpush.bf16.msrb.mxu0 %v1372_v29  ;;  %355 = vmatpush.bf16.msrb.mxu1 %v1436_v30  ;;  %v1353_v48 = vld [vmem:[#allocation5 + $0x48] sm:$0xf0]  ;;  %v1872_v49 = vld [vmem:[#allocation5 + $0xc4] sm:$0xf]  ;;  %v1416_v52 = vor.u32 %v1873_v46, %v1415_v45  ;;  %v1343_v53 = vld [vmem:[#allocation5 + $0x30] sm:$0xf] }
  0x1c   : > { %v1417_v50 = vld [vmem:[#allocation5 + $0xc8] sm:$0xf0]  ;;  %314 = vmatpush.bf16.msra.mxu2 %v1360_v39  ;;  %v1855_v54 = vld [vmem:[#allocation5 + $0x34] sm:$0xf0]  ;;  %v1356_v55 = vor.u32 %v1856_v47, %v1353_v48  ;;  %v1407_v57 = vld [vmem:[#allocation5 + $0xb0] sm:$0xf] }
  0x1d   : > { %328 = vmatpush.bf16.msra.mxu3 %v1424_v40  ;;  %v1420_v56 = vor.u32 %v1872_v49, %v1417_v50  ;;  %v1871_v58 = vld [vmem:[#allocation5 + $0xb4] sm:$0xf0]  ;;  %v1854_v59 = vld [vmem:[#allocation5 + $0x34] sm:$0xf]  ;;  %v1345_v60 = vld [vmem:[#allocation5 + $0x38] sm:$0xf0]  ;;  %v1344_v63 = vor.u32 %v1855_v54, %v1343_v53 }
  0x1e   : > { %v1870_v61 = vld [vmem:[#allocation5 + $0xb4] sm:$0xf]  ;;  %v1409_v62 = vld [vmem:[#allocation5 + $0xb8] sm:$0xf0]  ;;  %v1408_v4 = vor.u32 %v1871_v58, %v1407_v57  ;;  %v1348_v5 = vor.u32 %v1854_v59, %v1345_v60  ;;  %v1335_v7 = vld [vmem:[#allocation5 + $0x20] sm:$0xf] }
  0x1f   : > { %342 = vmatpush.bf16.msrb.mxu0 %v1364_v43  ;;  %356 = vmatpush.bf16.msrb.mxu1 %v1428_v44  ;;  %v1412_v6 = vor.u32 %v1870_v61, %v1409_v62  ;;  %v1853_v8 = vld [vmem:[#allocation5 + $0x24] sm:$0xf0]  ;;  %v1399_v11 = vld [vmem:[#allocation5 + $0xa0] sm:$0xf]  ;;  %v1852_v14 = vld [vmem:[#allocation5 + $0x24] sm:$0xf] }
  0x20   : > { %315 = vmatpush.bf16.msra.mxu2 %v1352_v51  ;;  %v1336_v12 = vor.u32 %v1853_v8, %v1335_v7  ;;  %v1869_v13 = vld [vmem:[#allocation5 + $0xa4] sm:$0xf0]  ;;  %v1337_v15 = vld [vmem:[#allocation5 + $0x28] sm:$0xf0]  ;;  %v1868_v18 = vld [vmem:[#allocation5 + $0xa4] sm:$0xf] }
  0x21   : > { %329 = vmatpush.bf16.msra.mxu3 %v1416_v52  ;;  %v1400_v16 = vor.u32 %v1869_v13, %v1399_v11  ;;  %v1340_v17 = vor.u32 %v1852_v14, %v1337_v15  ;;  %v1401_v19 = vld [vmem:[#allocation5 + $0xa8] sm:$0xf0]  ;;  %v1327_v21 = vld [vmem:[#allocation5 + $0x10] sm:$0xf]  ;;  %v1851_v22 = vld [vmem:[#allocation5 + $0x14] sm:$0xf0] }
  0x22   : > { %v1404_v20 = vor.u32 %v1868_v18, %v1401_v19  ;;  %v1391_v23 = vld [vmem:[#allocation5 + $0x90] sm:$0xf]  ;;  %v1328_v24 = vor.u32 %v1851_v22, %v1327_v21  ;;  %v1867_v25 = vld [vmem:[#allocation5 + $0x94] sm:$0xf0]  ;;  %v1850_v26 = vld [vmem:[#allocation5 + $0x14] sm:$0xf] }
  0x23   : > { %343 = vmatpush.bf16.msrb.mxu0 %v1356_v55  ;;  %357 = vmatpush.bf16.msrb.mxu1 %v1420_v56  ;;  %v1329_v27 = vld [vmem:[#allocation5 + $0x18] sm:$0xf0]  ;;  %v1392_v28 = vor.u32 %v1867_v25, %v1391_v23  ;;  %v1866_v30 = vld [vmem:[#allocation5 + $0x94] sm:$0xf]  ;;  %v1319_v33 = vld [vmem:[#allocation5] sm:$0xf] }
  0x24   : > { %316 = vmatpush.bf16.msra.mxu2 %v1344_v63  ;;  %v1332_v29 = vor.u32 %v1850_v26, %v1329_v27  ;;  %v1393_v31 = vld [vmem:[#allocation5 + $0x98] sm:$0xf0]  ;;  %v1849_v34 = vld [vmem:[#allocation5 + $0x4] sm:$0xf0]  ;;  %v1383_v35 = vld [vmem:[#allocation5 + $0x80] sm:$0xf] }
  0x25   : > { %330 = vmatpush.bf16.msra.mxu3 %v1408_v4  ;;  %v1396_v32 = vor.u32 %v1866_v30, %v1393_v31  ;;  %v1320_v36 = vor.u32 %v1849_v34, %v1319_v33  ;;  %v1865_v37 = vld [vmem:[#allocation5 + $0x84] sm:$0xf0]  ;;  %v1848_v38 = vld [vmem:[#allocation5 + $0x4] sm:$0xf]  ;;  %v1321_v39 = vld [vmem:[#allocation5 + $0x8] sm:$0xf0] }
  0x26   : > { %v1384_v40 = vor.u32 %v1865_v37, %v1383_v35  ;;  %v1324_v41 = vor.u32 %v1848_v38, %v1321_v39  ;;  %v1864_v42 = vld [vmem:[#allocation5 + $0x84] sm:$0xf]  ;;  %v1385_v43 = vld [vmem:[#allocation5 + $0x88] sm:$0xf0]  ;;  %v1509_v52 = vld [vmem:[#allocation5 + $0x170] sm:$0xf] }
  0x27   : > { %344 = vmatpush.bf16.msrb.mxu0 %v1348_v5  ;;  %358 = vmatpush.bf16.msrb.mxu1 %v1412_v6  ;;  %v1388_v44 = vor.u32 %v1864_v42, %v1385_v43  ;;  %v1880_v51 = vld [vmem:[#allocation2 + $0x8] sm:$0xff]  ;;  %v1896_v53 = vld [vmem:[#allocation5 + $0x174] sm:$0xf0]  ;;  %v1573_v54 = vld [vmem:[#allocation5 + $0x1f0] sm:$0xf]  ;;  %s72_s2 = sadd.s32 1, %s2169_s2  }
  0x28   : > { %317 = vmatpush.bf16.msra.mxu2 %v1336_v12  ;;  %v1510_v55 = vor.u32 %v1896_v53, %v1509_v52  ;;  %v1912_v56 = vld [vmem:[#allocation5 + $0x1f4] sm:$0xf0]  ;;  %v1895_v57 = vld [vmem:[#allocation5 + $0x174] sm:$0xf]  ;;  %v1511_v58 = vld [vmem:[#allocation5 + $0x178] sm:$0xf0] }
  0x29   : > { %331 = vmatpush.bf16.msra.mxu3 %v1400_v16  ;;  %v1574_v59 = vor.u32 %v1912_v56, %v1573_v54  ;;  %v1514_v60 = vor.u32 %v1895_v57, %v1511_v58  ;;  %v1911_v61 = vld [vmem:[#allocation5 + $0x1f4] sm:$0xf]  ;;  %v1575_v62 = vld [vmem:[#allocation5 + $0x1f8] sm:$0xf0]  ;;  %v1501_v4 = vld [vmem:[#allocation5 + $0x160] sm:$0xf] }
  0x2a   : > { %v1578_v63 = vor.u32 %v1911_v61, %v1575_v62  ;;  %v1894_v5 = vld [vmem:[#allocation5 + $0x164] sm:$0xf0]  ;;  %v1565_v6 = vld [vmem:[#allocation5 + $0x1e0] sm:$0xf]  ;;  %v1893_v11 = vld [vmem:[#allocation5 + $0x164] sm:$0xf] }
  0x2b   : > { %345 = vmatpush.bf16.msrb.mxu0 %v1340_v17  ;;  %359 = vmatpush.bf16.msrb.mxu1 %v1404_v20  ;;  %v1502_v7 = vor.u32 %v1894_v5, %v1501_v4  ;;  %v1910_v8 = vld [vmem:[#allocation5 + $0x1e4] sm:$0xf0]  ;;  %v1503_v12 = vld [vmem:[#allocation5 + $0x168] sm:$0xf0]  ;;  %v1909_v15 = vld [vmem:[#allocation5 + $0x1e4] sm:$0xf] }
  0x2c   : > { %318 = vmatpush.bf16.msra.mxu2 %v1328_v24  ;;  %v1566_v13 = vor.u32 %v1910_v8, %v1565_v6  ;;  %v1506_v14 = vor.u32 %v1893_v11, %v1503_v12  ;;  %v1567_v16 = vld [vmem:[#allocation5 + $0x1e8] sm:$0xf0]  ;;  %v1493_v18 = vld [vmem:[#allocation5 + $0x150] sm:$0xf]  ;;  %v1892_v19 = vld [vmem:[#allocation5 + $0x154] sm:$0xf0] }
  0x2d   : > { %332 = vmatpush.bf16.msra.mxu3 %v1392_v28  ;;  %v1570_v17 = vor.u32 %v1909_v15, %v1567_v16  ;;  %v1557_v20 = vld [vmem:[#allocation5 + $0x1d0] sm:$0xf]  ;;  %v1494_v21 = vor.u32 %v1892_v19, %v1493_v18  ;;  %v1908_v22 = vld [vmem:[#allocation5 + $0x1d4] sm:$0xf0]  ;;  %v1891_v23 = vld [vmem:[#allocation5 + $0x154] sm:$0xf] }
  0x2e   : > { %v1495_v24 = vld [vmem:[#allocation5 + $0x158] sm:$0xf0]  ;;  %v1558_v25 = vor.u32 %v1908_v22, %v1557_v20  ;;  %v1907_v27 = vld [vmem:[#allocation5 + $0x1d4] sm:$0xf]  ;;  %v1485_v30 = vld [vmem:[#allocation5 + $0x140] sm:$0xf] }
  0x2f   : > { %346 = vmatpush.bf16.msrb.mxu0 %v1332_v29  ;;  %360 = vmatpush.bf16.msrb.mxu1 %v1396_v32  ;;  %v1498_v26 = vor.u32 %v1891_v23, %v1495_v24  ;;  %v1559_v28 = vld [vmem:[#allocation5 + $0x1d8] sm:$0xf0]  ;;  %v1890_v31 = vld [vmem:[#allocation5 + $0x144] sm:$0xf0]  ;;  %v1549_v32 = vld [vmem:[#allocation5 + $0x1c0] sm:$0xf] }
  0x30   : > { %319 = vmatpush.bf16.msra.mxu2 %v1320_v36  ;;  %v1562_v29 = vor.u32 %v1907_v27, %v1559_v28  ;;  %v1486_v33 = vor.u32 %v1890_v31, %v1485_v30  ;;  %v1906_v34 = vld [vmem:[#allocation5 + $0x1c4] sm:$0xf0]  ;;  %v1889_v35 = vld [vmem:[#allocation5 + $0x144] sm:$0xf]  ;;  %v1487_v36 = vld [vmem:[#allocation5 + $0x148] sm:$0xf0] }
  0x31   : > { %333 = vmatpush.bf16.msra.mxu3 %v1384_v40  ;;  %v1550_v37 = vor.u32 %v1906_v34, %v1549_v32  ;;  %v1490_v38 = vor.u32 %v1889_v35, %v1487_v36  ;;  %v1905_v39 = vld [vmem:[#allocation5 + $0x1c4] sm:$0xf]  ;;  %v1551_v40 = vld [vmem:[#allocation5 + $0x1c8] sm:$0xf0]  ;;  %v1477_v42 = vld [vmem:[#allocation5 + $0x130] sm:$0xf] }
  0x32   : > { %v1888_v43 = vld [vmem:[#allocation5 + $0x134] sm:$0xf0]  ;;  %v1543_v52 = vld [vmem:[#allocation5 + $0x1b8] sm:$0xf0]  ;;  %v1469_v54 = vld [vmem:[#allocation5 + $0x120] sm:$0xf] }
  0x33   : > { %347 = vmatpush.bf16.msrb.mxu0 %v1324_v41  ;;  %361 = vmatpush.bf16.msrb.mxu1 %v1388_v44  ;;  %v1554_v41 = vor.u32 %v1905_v39, %v1551_v40  ;;  %v1541_v44 = vld [vmem:[#allocation5 + $0x1b0] sm:$0xf]  ;;  %v1533_v56 = vld [vmem:[#allocation5 + $0x1a0] sm:$0xf]  ;;  %v1902_v58 = vld [vmem:[#allocation5 + $0x1a4] sm:$0xf0] }
  0x34   : > { %394 = vmatpush.bf16.msrb.mxu2 %v2240_v9  ;;  %v1534_v61 = vor.u32 %v1902_v58, %v1533_v56  ;;  %v1535_v4 = vld [vmem:[#allocation5 + $0x1a8] sm:$0xf0]  ;;  %v1461_v5 = vld [vmem:[#allocation5 + $0x110] sm:$0xf]  ;;  %v1900_v11 = vld [vmem:[#allocation5 + $0x194] sm:$0xf0] }
  0x35   : > { %408 = vmatpush.bf16.msrb.mxu3 %v2244_v10  ;;  %v1525_v8 = vld [vmem:[#allocation5 + $0x190] sm:$0xf]  ;;  %v1463_v15 = vld [vmem:[#allocation5 + $0x118] sm:$0xf0]  ;;  %v1899_v16 = vld [vmem:[#allocation5 + $0x194] sm:$0xf] }
  0x36   : > { %v1527_v18 = vld [vmem:[#allocation5 + $0x198] sm:$0xf0]  ;;  %v1453_v20 = vld [vmem:[#allocation5 + $0x100] sm:$0xf]  ;;  %v1898_v24 = vld [vmem:[#allocation5 + $0x184] sm:$0xf0] }
  0x37   : > { %610 = vmatpush.bf16.msra.mxu0 %v1510_v55  ;;  %624 = vmatpush.bf16.msra.mxu1 %v1574_v59  ;;  %v1886_v55 = vld [vmem:[#allocation5 + $0x124] sm:$0xf0]  ;;  %v1885_v59 = vld [vmem:[#allocation5 + $0x124] sm:$0xf]  ;;  %v1530_v19 = vor.u32 %v1899_v16, %v1527_v18  ;;  %v1517_v22 = vld [vmem:[#allocation5 + $0x180] sm:$0xf] }
  0x38   : > { %v1470_v57 = vor.u32 %v1886_v55, %v1469_v54  ;;  %v1518_v27 = vor.u32 %v1898_v24, %v1517_v22  ;;  %v1519_v30 = vld [vmem:[#allocation5 + $0x188] sm:$0xf0]  ;;  %v1691_v16 = vld [vmem:[#allocation5 + $0x2d0] sm:$0xf]  ;;  %v1941_v18 = vld [vmem:[#allocation5 + $0x2d4] sm:$0xf0] }
  0x39   : > { %v1693_v24 = vld [vmem:[#allocation5 + $0x2d8] sm:$0xf0]  ;;  %p69_p0 = scmp.ge.s32.totalorder %s72_s2, 32  }
  0x3a   :  { %s1280_s6 = sshll.u32 (%p69_p0), %s2310_s3, 4  ;;  %s2180_s7 = smov (%p69_p0), [#allocation8]   ;;  %s1281_s6 = int_to_ptr.hbm [resolvable:$true] %s1280_s6 }
  0x3b   : > { %611 = vmatpush.bf16.msra.mxu0 %v1502_v7  ;;  %625 = vmatpush.bf16.msra.mxu1 %v1566_v13  ;;  %v1884_v7 = vld [vmem:[#allocation5 + $0x114] sm:$0xf0]  ;;  %v1526_v13 = vor.u32 %v1900_v11, %v1525_v8  ;;  %v1942_v11 = vld [vmem:[#allocation5 + $0x2e4] sm:$0xf]  ;;  %s1278_s8 = sshll.u32 (%p69_p0), %s2180_s7, 4  ;;  %s1279_s8 = int_to_ptr.vmem [resolvable:$true] %s1278_s8 }
  0x3c   : > { %v1462_v12 = vor.u32 %v1884_v7, %v1461_v5  ;;  %v1926_v5 = vld [vmem:[#allocation5 + $0x264] sm:$0xf] }
  0x3f   : > { %612 = vmatpush.bf16.msra.mxu0 %v1494_v21  ;;  %626 = vmatpush.bf16.msra.mxu1 %v1558_v25  ;;  %v1882_v21 = vld [vmem:[#allocation5 + $0x104] sm:$0xf0]  ;;  %v1881_v25 = vld [vmem:[#allocation5 + $0x104] sm:$0xf] }
  0x40   : > { %v1454_v23 = vor.u32 %v1882_v21, %v1453_v20  ;;  %v1629_v20 = vld [vmem:[#allocation5 + $0x258] sm:$0xf0]  ;;  %v1692_v21 = vor.u32 %v1941_v18, %v1691_v16  ;;  %v1932_v16 = vld [vmem:[#allocation5 + $0x294] sm:$0xf] }
  0x43   : > { %613 = vmatpush.bf16.msra.mxu0 %v1486_v33  ;;  %627 = vmatpush.bf16.msra.mxu1 %v1550_v37 }
  0x93   : > { %v99_v45 = vpop.f32.mrf.mxu0  ;;  %v113_v46 = vpop.f32.mrf.mxu1 }
  0x9b   : > { %v101_v47 = vpop.f32.mrf.mxu0  ;;  %v115_v48 = vpop.f32.mrf.mxu1 }
  0x9c   : > { %v118_v49 = vpack.c.bf16 %v101_v47, %v99_v45  ;;  %v119_v50 = vpack.c.bf16 %v115_v48, %v113_v46  ;;  %v1478_v45 = vor.u32 %v1888_v43, %v1477_v42  ;;  %v1904_v46 = vld [vmem:[#allocation5 + $0x1b4] sm:$0xf0]  ;;  %v1887_v47 = vld [vmem:[#allocation5 + $0x134] sm:$0xf]  ;;  %v1479_v48 = vld [vmem:[#allocation5 + $0x138] sm:$0xf0] }
  0x9d   : > { %v1929_v42 = vld [vmem:[#allocation5 + $0x274] sm:$0xf0] }
  0x9e   : > { %320 = vmatmul.bf16.vlgmr.msra.gmra.mxu2 %v118_v49  ;;  %334 = vmatmul.bf16.vlgmr.msra.gmra.mxu3 %v119_v50 }
  0x9f   : > { %348 = vmatmul.bf16.vlgmr.msrb.gmra.mxu0 %v118_v49  ;;  %362 = vmatmul.bf16.vlgmr.msrb.gmra.mxu1 %v119_v50  ;;  %v1542_v49 = vor.u32 %v1904_v46, %v1541_v44  ;;  %v1482_v50 = vor.u32 %v1887_v47, %v1479_v48  ;;  %v1707_v44 = vld [vmem:[#allocation5 + $0x2f0] sm:$0xf] }
  0xa0   : > { %638 = vmatpush.bf16.msra.mxu2 %v1514_v60  ;;  %652 = vmatpush.bf16.msra.mxu3 %v1578_v63  ;;  %v1471_v60 = vld [vmem:[#allocation5 + $0x128] sm:$0xf0]  ;;  %v1901_v63 = vld [vmem:[#allocation5 + $0x1a4] sm:$0xf] }
  0xa1   : > { %614 = vmatpush.bf16.msra.mxu0 %v1478_v45  ;;  %628 = vmatpush.bf16.msra.mxu1 %v1542_v49  ;;  %v1474_v62 = vor.u32 %v1885_v59, %v1471_v60  ;;  %v1538_v6 = vor.u32 %v1901_v63, %v1535_v4  ;;  %v1945_v45 = vld [vmem:[#allocation5 + $0x2f4] sm:$0xf0]  ;;  %v1928_v49 = vld [vmem:[#allocation5 + $0x274] sm:$0xf]  ;;  %v1635_v60 = vld [vmem:[#allocation5 + $0x260] sm:$0xf] }
  0xa2   : > { %v1708_v46 = vor.u32 %v1945_v45, %v1707_v44  ;;  %v1913_v59 = vld [vmem:[#allocation2 + $0x10] sm:$0xff]  ;;  %v1943_v4 = vld [vmem:[#allocation5 + $0x2e4] sm:$0xf0]  ;;  %v1937_v45 = vld [vmem:[#allocation5 + $0x2b4] sm:$0xf0] }
  0xa4   : > { %639 = vmatpush.bf16.msra.mxu2 %v1506_v14  ;;  %653 = vmatpush.bf16.msra.mxu3 %v1570_v17  ;;  %v1883_v14 = vld [vmem:[#allocation5 + $0x114] sm:$0xf] }
  0xa5   : > { %615 = vmatpush.bf16.msra.mxu0 %v1470_v57  ;;  %629 = vmatpush.bf16.msra.mxu1 %v1534_v61  ;;  %v1466_v17 = vor.u32 %v1883_v14, %v1463_v15  ;;  %v1927_v61 = vld [vmem:[#allocation5 + $0x264] sm:$0xf0]  ;;  %v1627_v14 = vld [vmem:[#allocation5 + $0x250] sm:$0xf]  ;;  %v1925_v15 = vld [vmem:[#allocation5 + $0x254] sm:$0xf0] }
  0xa6   : > { %v1636_v63 = vor.u32 %v1927_v61, %v1635_v60 }
  0xa8   : > { %640 = vmatpush.bf16.msra.mxu2 %v1498_v26  ;;  %654 = vmatpush.bf16.msra.mxu3 %v1562_v29  ;;  %v1455_v26 = vld [vmem:[#allocation5 + $0x108] sm:$0xf0]  ;;  %v1897_v29 = vld [vmem:[#allocation5 + $0x184] sm:$0xf] }
  0xa9   : > { %616 = vmatpush.bf16.msra.mxu0 %v1462_v12  ;;  %630 = vmatpush.bf16.msra.mxu1 %v1526_v13  ;;  %v1458_v28 = vor.u32 %v1881_v25, %v1455_v26  ;;  %v1522_v31 = vor.u32 %v1897_v29, %v1519_v30  ;;  %v1701_v12 = vld [vmem:[#allocation5 + $0x2e8] sm:$0xf0]  ;;  %v1619_v26 = vld [vmem:[#allocation5 + $0x240] sm:$0xf]  ;;  %v1939_v30 = vld [vmem:[#allocation5 + $0x2c4] sm:$0xf0] }
  0xaa   : > { %v1704_v13 = vor.u32 %v1942_v11, %v1701_v12  ;;  %v1933_v11 = vld [vmem:[#allocation5 + $0x294] sm:$0xf0]  ;;  %v1916_v12 = vld [vmem:[#allocation5 + $0x214] sm:$0xf] }
  0xac   : > { %641 = vmatpush.bf16.msra.mxu2 %v1490_v38  ;;  %655 = vmatpush.bf16.msra.mxu3 %v1554_v41  ;;  %v1643_v41 = vld [vmem:[#allocation5 + $0x270] sm:$0xf] }
  0xad   : > { %617 = vmatpush.bf16.msra.mxu0 %v1454_v23  ;;  %631 = vmatpush.bf16.msra.mxu1 %v1518_v27  ;;  %v1644_v43 = vor.u32 %v1929_v42, %v1643_v41  ;;  %v1940_v23 = vld [vmem:[#allocation5 + $0x2d4] sm:$0xf]  ;;  %v1923_v27 = vld [vmem:[#allocation5 + $0x244] sm:$0xf0]  ;;  %v1611_v41 = vld [vmem:[#allocation5 + $0x230] sm:$0xf] }
  0xae   : > { %1449 = vmatmul.msk.bf16.vlgmr.msrb.gmra.mxu2 %vm86_vm0, %v1880_v51  ;;  %1450 = vmatmul.msk.bf16.vlgmr.msrb.gmra.mxu3 %vm86_vm0, %v1880_v51  ;;  %v1903_v51 = vld [vmem:[#allocation5 + $0x1b4] sm:$0xf]  ;;  %v1696_v25 = vor.u32 %v1940_v23, %v1693_v24  ;;  %v1620_v29 = vor.u32 %v1923_v27, %v1619_v26  ;;  %v1921_v42 = vld [vmem:[#allocation5 + $0x234] sm:$0xf0]  ;;  %v1931_v23 = vld [vmem:[#allocation5 + $0x284] sm:$0xf0] }
  0xaf   : > { %v1546_v53 = vor.u32 %v1903_v51, %v1543_v52  ;;  %v1944_v51 = vld [vmem:[#allocation5 + $0x2f4] sm:$0xf]  ;;  %v1709_v52 = vld [vmem:[#allocation5 + $0x2f8] sm:$0xf0]  ;;  %v1612_v44 = vor.u32 %v1921_v42, %v1611_v41  ;;  %v1914_v24 = vld [vmem:[#allocation5 + $0x204] sm:$0xf] }
  0xb0   : > { %642 = vmatpush.bf16.msra.mxu2 %v1482_v50  ;;  %v1645_v50 = vld [vmem:[#allocation5 + $0x278] sm:$0xf0]  ;;  %v1712_v58 = vor.u32 %v1944_v51, %v1709_v52 }
  0xb1   : > { %656 = vmatpush.bf16.msra.mxu3 %v1546_v53  ;;  %692 = vmatpush.bf16.msrb.mxu0 %v2240_v9  ;;  %v1648_v57 = vor.u32 %v1928_v49, %v1645_v50  ;;  %v1936_v50 = vld [vmem:[#allocation5 + $0x2b4] sm:$0xf]  ;;  %v1677_v51 = vld [vmem:[#allocation5 + $0x2b8] sm:$0xf0] }
  0xb2   : > { %706 = vmatpush.bf16.msrb.mxu1 %v2244_v10  ;;  %v1680_v52 = vor.u32 %v1936_v50, %v1677_v51 }
  0xb4   : > { %643 = vmatpush.bf16.msra.mxu2 %v1474_v62  ;;  %v1699_v62 = vld [vmem:[#allocation5 + $0x2e0] sm:$0xf] }
  0xb5   : > { %657 = vmatpush.bf16.msra.mxu3 %v1538_v6  ;;  %v1637_v6 = vld [vmem:[#allocation5 + $0x268] sm:$0xf0]  ;;  %v1700_v7 = vor.u32 %v1943_v4, %v1699_v62  ;;  %v1934_v62 = vld [vmem:[#allocation5 + $0x2a4] sm:$0xf] }
  0xb6   : > { %v1640_v8 = vor.u32 %v1926_v5, %v1637_v6  ;;  %v1595_v5 = vld [vmem:[#allocation5 + $0x210] sm:$0xf]  ;;  %v1917_v6 = vld [vmem:[#allocation5 + $0x214] sm:$0xf0] }
  0xb8   : > { %644 = vmatpush.bf16.msra.mxu2 %v1466_v17  ;;  %v1628_v17 = vor.u32 %v1925_v15, %v1627_v14 }
  0xb9   : > { %658 = vmatpush.bf16.msra.mxu3 %v1530_v19  ;;  %v1924_v19 = vld [vmem:[#allocation5 + $0x254] sm:$0xf] }
  0xba   : > { %v1632_v22 = vor.u32 %v1924_v19, %v1629_v20  ;;  %v1587_v19 = vld [vmem:[#allocation5 + $0x200] sm:$0xf]  ;;  %v1915_v20 = vld [vmem:[#allocation5 + $0x204] sm:$0xf0] }
  0xbc   : > { %645 = vmatpush.bf16.msra.mxu2 %v1458_v28  ;;  %v1683_v28 = vld [vmem:[#allocation5 + $0x2c0] sm:$0xf] }
  0xbd   : > { %659 = vmatpush.bf16.msra.mxu3 %v1522_v31  ;;  %v1922_v31 = vld [vmem:[#allocation5 + $0x244] sm:$0xf] }
  0xc0   : > { %908 = vmatpush.bf16.msrb.mxu2 %v1644_v43  ;;  %v1675_v43 = vld [vmem:[#allocation5 + $0x2b0] sm:$0xf] }
  0xc1   : > { %922 = vmatpush.bf16.msrb.mxu3 %v1708_v46  ;;  %v1920_v46 = vld [vmem:[#allocation5 + $0x234] sm:$0xf] }
  0xc4   : > { %909 = vmatpush.bf16.msrb.mxu2 %v1636_v63  ;;  %v1669_v63 = vld [vmem:[#allocation5 + $0x2a8] sm:$0xf0] }
  0xc5   : > { %923 = vmatpush.bf16.msrb.mxu3 %v1700_v7  ;;  %v1672_v4 = vor.u32 %v1934_v62, %v1669_v63  ;;  %v1659_v7 = vld [vmem:[#allocation5 + $0x290] sm:$0xf]  ;;  %v1779_v62 = vld [vmem:[#allocation5 + $0x378] sm:$0xf0] }
  0xc6   : > { %v1660_v14 = vor.u32 %v1933_v11, %v1659_v7  ;;  %v1960_v11 = vld [vmem:[#allocation5 + $0x364] sm:$0xf0] }
  0xc8   : > { %910 = vmatpush.bf16.msrb.mxu2 %v1628_v17  ;;  %v1661_v17 = vld [vmem:[#allocation5 + $0x298] sm:$0xf0] }
  0xc9   : > { %924 = vmatpush.bf16.msrb.mxu3 %v1692_v21  ;;  %v1664_v18 = vor.u32 %v1932_v16, %v1661_v17  ;;  %v1651_v21 = vld [vmem:[#allocation5 + $0x280] sm:$0xf]  ;;  %v1771_v16 = vld [vmem:[#allocation5 + $0x368] sm:$0xf0] }
  0xcc   : > { %911 = vmatpush.bf16.msrb.mxu2 %v1620_v29 }
  0xd0   : > { %912 = vmatpush.bf16.msrb.mxu2 %v1612_v44 }
 0x11c   : > { %v349_v32 = vpop.f32.mrf.mxu0  ;;  %v363_v33 = vpop.f32.mrf.mxu1 }
 0x11d   : > { %v2255_v34 = vadd.f32 %v363_v33, %v349_v32  ;;  %v1621_v32 = vld [vmem:[#allocation5 + $0x248] sm:$0xf0]  ;;  %v1684_v33 = vor.u32 %v1939_v30, %v1683_v28  ;;  %v1652_v28 = vor.u32 %v1931_v23, %v1651_v21  ;;  %v1930_v30 = vld [vmem:[#allocation5 + $0x284] sm:$0xf]  ;;  %v1958_v23 = vld [vmem:[#allocation5 + $0x354] sm:$0xf0] }
 0x11f   : > { %925 = vmatpush.bf16.msrb.mxu3 %v1684_v33 }
 0x121   : > { %v321_v35 = vpop.f32.mrf.mxu2  ;;  %v335_v36 = vpop.f32.mrf.mxu3 }
 0x122   : > { %v2258_v37 = vadd.f32 %v335_v36, %v321_v35  ;;  %v1624_v35 = vor.u32 %v1922_v31, %v1621_v32  ;;  %v1938_v36 = vld [vmem:[#allocation5 + $0x2c4] sm:$0xf]  ;;  %v1653_v31 = vld [vmem:[#allocation5 + $0x288] sm:$0xf0] }
 0x123   : > { %v1656_v32 = vor.u32 %v1930_v30, %v1653_v31  ;;  %v1763_v30 = vld [vmem:[#allocation5 + $0x358] sm:$0xf0] }
 0x124   : > { %v2264_v26 = vpop.f32.mrf.mxu0  ;;  %v2266_v27 = vpop.f32.mrf.mxu1  ;;  %v368_v33 = vmul.f32 0.03125, %v2258_v37 }
 0x129   : > { %v323_v38 = vpop.f32.mrf.mxu2  ;;  %v337_v39 = vpop.f32.mrf.mxu3 }
 0x12a   : > { %v2260_v40 = vadd.f32 %v337_v39, %v323_v38  ;;  %v1685_v38 = vld [vmem:[#allocation5 + $0x2c8] sm:$0xf0] }
 0x12b   : > { %v1688_v39 = vor.u32 %v1938_v36, %v1685_v38 }
 0x12c   : > { %v370_v44 = vmul.f32 0.03125, %v2260_v40 }
 0x12e   : > { %v374_v50 = vadd.f32 %v2157_v2, %v370_v44  ;;  %v1962_v2 = vld [vmem:[#allocation5 + $0x374] sm:$0xf0]  ;;  %v1972_v44 = vld [vmem:[#allocation5 + $0x3c4] sm:$0xf0] }
 0x131   : > { %v396_v47 = vpop.f32.mrf.mxu2  ;;  %v410_v48 = vpop.f32.mrf.mxu3 }
 0x139   : > { %v398_v53 = vpop.f32.mrf.mxu2  ;;  %v412_v54 = vpop.f32.mrf.mxu3 }
 0x13a   : > { %v415_v55 = vpack.c.bf16 %v398_v53, %v396_v47  ;;  %v416_v56 = vpack.c.bf16 %v412_v54, %v410_v48  ;;  %v1613_v47 = vld [vmem:[#allocation5 + $0x238] sm:$0xf0]  ;;  %v1676_v48 = vor.u32 %v1937_v45, %v1675_v43  ;;  %v1603_v53 = vld [vmem:[#allocation5 + $0x220] sm:$0xf]  ;;  %v1919_v54 = vld [vmem:[#allocation5 + $0x224] sm:$0xf0] }
 0x13b   : > { %v1616_v49 = vor.u32 %v1920_v46, %v1613_v47  ;;  %v369_v43 = vmul.f32 0.03125, %v2255_v34 }
 0x13c   : > { %618 = vmatmul.bf16.vlgmr.msra.gmra.mxu0 %v415_v55  ;;  %632 = vmatmul.bf16.vlgmr.msra.gmra.mxu1 %v416_v56 }
 0x13d   : > { %646 = vmatmul.bf16.vlgmr.msra.gmra.mxu2 %v415_v55  ;;  %660 = vmatmul.bf16.vlgmr.msra.gmra.mxu3 %v416_v56  ;;  %v1667_v55 = vld [vmem:[#allocation5 + $0x2a0] sm:$0xf]  ;;  %v1604_v56 = vor.u32 %v1919_v54, %v1603_v53  ;;  %v373_v37 = vadd.f32 %v2161_v1, %v369_v43  ;;  %v1777_v1 = vld [vmem:[#allocation5 + $0x370] sm:$0xf] }
 0x13e   : > { %936 = vmatpush.bf16.msra.mxu0 %v1648_v57  ;;  %950 = vmatpush.bf16.msra.mxu1 %v1712_v58  ;;  %v1935_v57 = vld [vmem:[#allocation5 + $0x2a4] sm:$0xf0]  ;;  %v1918_v58 = vld [vmem:[#allocation5 + $0x224] sm:$0xf] }
 0x13f   : > { %926 = vmatpush.bf16.msrb.mxu3 %v1676_v48  ;;  %v1668_v60 = vor.u32 %v1935_v57, %v1667_v55  ;;  %913 = vmatpush.bf16.msrb.mxu2 %v1604_v56  ;;  %v1946_v57 = vld [vmem:[#allocation2 + $0x18] sm:$0xff] }
 0x142   : > { %937 = vmatpush.bf16.msra.mxu0 %v1640_v8  ;;  %951 = vmatpush.bf16.msra.mxu1 %v1704_v13  ;;  %v1596_v8 = vor.u32 %v1917_v6, %v1595_v5  ;;  %v1597_v13 = vld [vmem:[#allocation5 + $0x218] sm:$0xf0]  ;;  %v1977_v5 = vld [vmem:[#allocation5 + $0x3f4] sm:$0xf] }
 0x143   : > { %927 = vmatpush.bf16.msrb.mxu3 %v1668_v60  ;;  %v1600_v15 = vor.u32 %v1916_v12, %v1597_v13  ;;  %v1978_v60 = vld [vmem:[#allocation5 + $0x3f4] sm:$0xf0]  ;;  %v1843_v6 = vld [vmem:[#allocation5 + $0x3f8] sm:$0xf0]  ;;  %v1833_v12 = vld [vmem:[#allocation5 + $0x3e0] sm:$0xf] }
 0x144   : > { %914 = vmatpush.bf16.msrb.mxu2 %v1596_v8  ;;  %v1846_v7 = vor.u32 %v1977_v5, %v1843_v6  ;;  %v1769_v8 = vld [vmem:[#allocation5 + $0x360] sm:$0xf] }
 0x145   : > { %v1770_v13 = vor.u32 %v1960_v11, %v1769_v8  ;;  %v1803_v8 = vld [vmem:[#allocation5 + $0x3a8] sm:$0xf0]  ;;  %v1729_v11 = vld [vmem:[#allocation5 + $0x310] sm:$0xf] }
 0x146   : > { %938 = vmatpush.bf16.msra.mxu0 %v1632_v22  ;;  %952 = vmatpush.bf16.msra.mxu1 %v1696_v25  ;;  %v1588_v22 = vor.u32 %v1915_v20, %v1587_v19  ;;  %v1589_v25 = vld [vmem:[#allocation5 + $0x208] sm:$0xf0]  ;;  %v1975_v19 = vld [vmem:[#allocation5 + $0x3e4] sm:$0xf] }
 0x147   : > { %928 = vmatpush.bf16.msrb.mxu3 %v1660_v14  ;;  %v1592_v29 = vor.u32 %v1914_v24, %v1589_v25  ;;  %v1976_v14 = vld [vmem:[#allocation5 + $0x3e4] sm:$0xf0]  ;;  %v1835_v20 = vld [vmem:[#allocation5 + $0x3e8] sm:$0xf0]  ;;  %v1825_v24 = vld [vmem:[#allocation5 + $0x3d0] sm:$0xf] }
 0x148   : > { %915 = vmatpush.bf16.msrb.mxu2 %v1588_v22  ;;  %v1834_v17 = vor.u32 %v1976_v14, %v1833_v12  ;;  %v1838_v21 = vor.u32 %v1975_v19, %v1835_v20  ;;  %v1761_v22 = vld [vmem:[#allocation5 + $0x350] sm:$0xf]  ;;  %v1731_v19 = vld [vmem:[#allocation5 + $0x318] sm:$0xf0]  ;;  %v1965_v20 = vld [vmem:[#allocation5 + $0x394] sm:$0xf] }
 0x149   : > { %v1762_v25 = vor.u32 %v1958_v23, %v1761_v22  ;;  %v1793_v14 = vld [vmem:[#allocation5 + $0x390] sm:$0xf]  ;;  %v1795_v22 = vld [vmem:[#allocation5 + $0x398] sm:$0xf0] }
 0x14a   : > { %939 = vmatpush.bf16.msra.mxu0 %v1624_v35  ;;  %953 = vmatpush.bf16.msra.mxu1 %v1688_v39  ;;  %v372_v39 = vadd.f32 %v2165_v0, %v368_v33  ;;  %v1973_v33 = vld [vmem:[#allocation5 + $0x3d4] sm:$0xf]  ;;  %v1798_v23 = vor.u32 %v1965_v20, %v1795_v22 }
 0x14b   : > { %929 = vmatpush.bf16.msrb.mxu3 %v1652_v28  ;;  %v1974_v28 = vld [vmem:[#allocation5 + $0x3d4] sm:$0xf0] }
 0x14c   : > { %1583 = vmatmul.msk.bf16.vlgmr.msrb.gmra.mxu0 %vm86_vm0, %v1913_v59  ;;  %1584 = vmatmul.msk.bf16.vlgmr.msrb.gmra.mxu1 %vm86_vm0, %v1913_v59  ;;  %v1605_v59 = vld [vmem:[#allocation5 + $0x228] sm:$0xf0]  ;;  %v1826_v31 = vor.u32 %v1974_v28, %v1825_v24  ;;  %v1721_v24 = vld [vmem:[#allocation5 + $0x300] sm:$0xf] }
 0x14d   : > { %v1608_v61 = vor.u32 %v1918_v58, %v1605_v59  ;;  %990 = vmatpush.bf16.msra.mxu2 %v2240_v9  ;;  %v1841_v58 = vld [vmem:[#allocation5 + $0x3f0] sm:$0xf]  ;;  %v1778_v59 = vor.u32 %v1962_v2, %v1777_v1  ;;  %v1811_v1 = vld [vmem:[#allocation5 + $0x3b8] sm:$0xf0]  ;;  %v1785_v28 = vld [vmem:[#allocation5 + $0x380] sm:$0xf] }
 0x14e   : > { %940 = vmatpush.bf16.msra.mxu0 %v1616_v49  ;;  %954 = vmatpush.bf16.msra.mxu1 %v1680_v52  ;;  %v1842_v63 = vor.u32 %v1978_v60, %v1841_v58  ;;  %v1737_v58 = vld [vmem:[#allocation5 + $0x320] sm:$0xf] }
 0x14f   : > { %1004 = vmatpush.bf16.msra.mxu3 %v2244_v10  ;;  %v1801_v60 = vld [vmem:[#allocation5 + $0x3a0] sm:$0xf] }
 0x152   : > { %941 = vmatpush.bf16.msra.mxu0 %v1608_v61  ;;  %955 = vmatpush.bf16.msra.mxu1 %v1672_v4  ;;  %v1961_v61 = vld [vmem:[#allocation5 + $0x374] sm:$0xf] }
 0x153   : > { %v1782_v4 = vor.u32 %v1961_v61, %v1779_v62  ;;  %v1968_v62 = vld [vmem:[#allocation5 + $0x3a4] sm:$0xf0] }
 0x154   : > { %v1802_v5 = vor.u32 %v1968_v62, %v1801_v60  ;;  %v366_v62 = vadd.f32 %v2266_v27, %v2264_v26 }
 0x156   : > { %942 = vmatpush.bf16.msra.mxu0 %v1600_v15  ;;  %956 = vmatpush.bf16.msra.mxu1 %v1664_v18  ;;  %v1959_v15 = vld [vmem:[#allocation5 + $0x364] sm:$0xf] }
 0x157   : > { %v1774_v18 = vor.u32 %v1959_v15, %v1771_v16  ;;  %v1966_v15 = vld [vmem:[#allocation5 + $0x394] sm:$0xf0] }
 0x15a   : > { %943 = vmatpush.bf16.msra.mxu0 %v1592_v29  ;;  %957 = vmatpush.bf16.msra.mxu1 %v1656_v32  ;;  %v1957_v29 = vld [vmem:[#allocation5 + $0x354] sm:$0xf] }
 0x15b   : > { %v1766_v32 = vor.u32 %v1957_v29, %v1763_v30  ;;  %v1964_v30 = vld [vmem:[#allocation5 + $0x384] sm:$0xf0] }
 0x15e   : > { %1206 = vmatpush.bf16.msrb.mxu0 %v1778_v59  ;;  %1220 = vmatpush.bf16.msrb.mxu1 %v1842_v63  ;;  %v1952_v59 = vld [vmem:[#allocation5 + $0x324] sm:$0xf0]  ;;  %v1951_v63 = vld [vmem:[#allocation5 + $0x324] sm:$0xf] }
 0x15f   : > { %v1738_v61 = vor.u32 %v1952_v59, %v1737_v58 }
 0x162   : > { %1207 = vmatpush.bf16.msrb.mxu0 %v1770_v13  ;;  %1221 = vmatpush.bf16.msrb.mxu1 %v1834_v17  ;;  %v1950_v13 = vld [vmem:[#allocation5 + $0x314] sm:$0xf0]  ;;  %v1794_v17 = vor.u32 %v1966_v15, %v1793_v14 }
 0x163   : > { %v1730_v16 = vor.u32 %v1950_v13, %v1729_v11  ;;  %v371_v13 = vmul.f32 0.03125, %v366_v62 }
 0x166   : > { %1208 = vmatpush.bf16.msrb.mxu0 %v1762_v25  ;;  %1222 = vmatpush.bf16.msrb.mxu1 %v1826_v31  ;;  %v1948_v25 = vld [vmem:[#allocation5 + $0x304] sm:$0xf0]  ;;  %v1947_v31 = vld [vmem:[#allocation5 + $0x304] sm:$0xf] }
 0x167   : > { %v1722_v29 = vor.u32 %v1948_v25, %v1721_v24 }
 0x1b9   : > { %v619_v35 = vpop.f32.mrf.mxu0  ;;  %v633_v36 = vpop.f32.mrf.mxu1 }
 0x1ba   : > { %v634_v38 = vadd.f32 %v633_v36, %v619_v35  ;;  %v1827_v35 = vld [vmem:[#allocation5 + $0x3d8] sm:$0xf0] }
 0x1bb   : > { %v1830_v36 = vor.u32 %v1973_v33, %v1827_v35 }
 0x1bc   : > { %v666_v41 = vmul.f32 0.00048828125, %v634_v38  ;;  %v1753_v38 = vld [vmem:[#allocation5 + $0x340] sm:$0xf] }
 0x1be   : > { %v2272_v42 = vadd.f32 %v666_v41, %v372_v39  ;;  %v1956_v39 = vld [vmem:[#allocation5 + $0x344] sm:$0xf0]  ;;  %v1817_v41 = vld [vmem:[#allocation5 + $0x3c0] sm:$0xf] }
 0x1bf   : > { %v1754_v43 = vor.u32 %v1956_v39, %v1753_v38  ;;  %v1963_v39 = vld [vmem:[#allocation5 + $0x384] sm:$0xf] }
 0x1c0   : > { %v647_v45 = vpop.f32.mrf.mxu2  ;;  %v661_v46 = vpop.f32.mrf.mxu3 }
 0x1c1   : > { %v662_v47 = vadd.f32 %v661_v46, %v647_v45  ;;  %v621_v9 = vpop.f32.mrf.mxu0  ;;  %v635_v48 = vpop.f32.mrf.mxu1  ;;  %v1955_v45 = vld [vmem:[#allocation5 + $0x344] sm:$0xf]  ;;  %v1755_v46 = vld [vmem:[#allocation5 + $0x348] sm:$0xf0]  ;;  %1209 = vmatpush.bf16.msrb.mxu0 %v1754_v43 }
 0x1c2   : > { %v636_v10 = vadd.f32 %v635_v48, %v621_v9  ;;  %v1758_v9 = vor.u32 %v1955_v45, %v1755_v46  ;;  %v1971_v48 = vld [vmem:[#allocation5 + $0x3c4] sm:$0xf] }
 0x1c3   : > { %v667_v49 = vmul.f32 0.00048828125, %v662_v47  ;;  %v1818_v47 = vor.u32 %v1972_v44, %v1817_v41  ;;  %v1787_v41 = vld [vmem:[#allocation5 + $0x388] sm:$0xf0] }
 0x1c4   : > { %v668_v51 = vmul.f32 0.00048828125, %v636_v10  ;;  %v1819_v10 = vld [vmem:[#allocation5 + $0x3c8] sm:$0xf0]  ;;  %v1790_v43 = vor.u32 %v1963_v39, %v1787_v41 }
 0x1c5   : > { %v2278_v0 = vadd.f32 %v667_v49, %v373_v37  ;;  %v1822_v37 = vor.u32 %v1971_v48, %v1819_v10  ;;  %1223 = vmatpush.bf16.msrb.mxu1 %v1818_v47  ;;  %v1745_v49 = vld [vmem:[#allocation5 + $0x330] sm:$0xf] }
 0x1c6   : > { %v2280_v52 = vadd.f32 %v668_v51, %v374_v50  ;;  %v1954_v50 = vld [vmem:[#allocation5 + $0x334] sm:$0xf0]  ;;  %v1809_v51 = vld [vmem:[#allocation5 + $0x3b0] sm:$0xf] }
 0x1c8   : > { %v649_v33 = vpop.f32.mrf.mxu2  ;;  %v663_v35 = vpop.f32.mrf.mxu3 }
 0x1c9   : > { %v694_v53 = vpop.f32.mrf.mxu0  ;;  %v708_v34 = vpop.f32.mrf.mxu1 }
 0x1d1   : > { %v696_v54 = vpop.f32.mrf.mxu0  ;;  %v710_v40 = vpop.f32.mrf.mxu1 }
 0x1d2   : > { %v713_v55 = vpack.c.bf16 %v696_v54, %v694_v53  ;;  %v714_v56 = vpack.c.bf16 %v710_v40, %v708_v34  ;;  %v1746_v53 = vor.u32 %v1954_v50, %v1745_v49  ;;  %v1970_v34 = vld [vmem:[#allocation5 + $0x3b4] sm:$0xf0]  ;;  %v1953_v54 = vld [vmem:[#allocation5 + $0x334] sm:$0xf]  ;;  %v1747_v40 = vld [vmem:[#allocation5 + $0x338] sm:$0xf0] }
 0x1d4   : > { %916 = vmatmul.bf16.vlgmr.msrb.gmra.mxu2 %v713_v55  ;;  %930 = vmatmul.bf16.vlgmr.msrb.gmra.mxu3 %v714_v56 }
 0x1d5   : > { %944 = vmatmul.bf16.vlgmr.msra.gmra.mxu0 %v713_v55  ;;  %958 = vmatmul.bf16.vlgmr.msra.gmra.mxu1 %v714_v56  ;;  %v1810_v55 = vor.u32 %v1970_v34, %v1809_v51  ;;  %v1750_v56 = vor.u32 %v1953_v54, %v1747_v40 }
 0x1d6   : > { %1234 = vmatpush.bf16.msrb.mxu2 %v1782_v4  ;;  %1248 = vmatpush.bf16.msrb.mxu3 %v1846_v7  ;;  %v1739_v4 = vld [vmem:[#allocation5 + $0x328] sm:$0xf0]  ;;  %v1967_v7 = vld [vmem:[#allocation5 + $0x3a4] sm:$0xf] }
 0x1d7   : > { %1210 = vmatpush.bf16.msrb.mxu0 %v1746_v53  ;;  %1224 = vmatpush.bf16.msrb.mxu1 %v1810_v55  ;;  %v1742_v6 = vor.u32 %v1951_v63, %v1739_v4  ;;  %v1806_v12 = vor.u32 %v1967_v7, %v1803_v8 }
 0x1da   : > { %1235 = vmatpush.bf16.msrb.mxu2 %v1774_v18  ;;  %1249 = vmatpush.bf16.msrb.mxu3 %v1838_v21  ;;  %v1949_v18 = vld [vmem:[#allocation5 + $0x314] sm:$0xf] }
 0x1db   : > { %1211 = vmatpush.bf16.msrb.mxu0 %v1738_v61  ;;  %1225 = vmatpush.bf16.msrb.mxu1 %v1802_v5  ;;  %v1734_v21 = vor.u32 %v1949_v18, %v1731_v19 }
 0x1de   : > { %1236 = vmatpush.bf16.msrb.mxu2 %v1766_v32  ;;  %1250 = vmatpush.bf16.msrb.mxu3 %v1830_v36  ;;  %v1723_v32 = vld [vmem:[#allocation5 + $0x308] sm:$0xf0]  ;;  %v1786_v36 = vor.u32 %v1964_v30, %v1785_v28 }
 0x1df   : > { %1212 = vmatpush.bf16.msrb.mxu0 %v1730_v16  ;;  %1226 = vmatpush.bf16.msrb.mxu1 %v1794_v17  ;;  %v1726_v38 = vor.u32 %v1947_v31, %v1723_v32 }
 0x1e2   : > { %1237 = vmatpush.bf16.msrb.mxu2 %v1758_v9  ;;  %1251 = vmatpush.bf16.msrb.mxu3 %v1822_v37 }
 0x1e3   : > { %1213 = vmatpush.bf16.msrb.mxu0 %v1722_v29  ;;  %1227 = vmatpush.bf16.msrb.mxu1 %v1786_v36 }
 0x1e4   : > { %1717 = vmatmul.msk.bf16.vlgmr.msra.gmra.mxu2 %vm86_vm0, %v1946_v57  ;;  %1718 = vmatmul.msk.bf16.vlgmr.msra.gmra.mxu3 %vm86_vm0, %v1946_v57  ;;  %v1969_v57 = vld [vmem:[#allocation5 + $0x3b4] sm:$0xf] }
 0x1e5   : > { %v1814_v2 = vor.u32 %v1969_v57, %v1811_v1 }
 0x1e6   : > { %1238 = vmatpush.bf16.msrb.mxu2 %v1750_v56 }
 0x1e7   : > { %1252 = vmatpush.bf16.msrb.mxu3 %v1814_v2 }
 0x1ea   : > { %1239 = vmatpush.bf16.msrb.mxu2 %v1742_v6  ;;  %v664_v6 = vadd.f32 %v663_v35, %v649_v33 }
 0x1eb   : > { %1253 = vmatpush.bf16.msrb.mxu3 %v1806_v12 }
 0x1ec   : > { %v669_v18 = vmul.f32 0.00048828125, %v664_v6 }
 0x1ee   : > { %1240 = vmatpush.bf16.msrb.mxu2 %v1734_v21  ;;  %v375_v21 = vadd.f32 %v2153_v3, %v371_v13 }
 0x1ef   : > { %1254 = vmatpush.bf16.msrb.mxu3 %v1798_v23 }
 0x1f0   : > { %v673_v23 = vadd.f32 %v669_v18, %v375_v21 }
 0x1f2   : > { %1241 = vmatpush.bf16.msrb.mxu2 %v1726_v38 }
 0x1f3   : > { %1255 = vmatpush.bf16.msrb.mxu3 %v1790_v43 }
 0x252   : > { %v945_v56 = vpop.f32.mrf.mxu0  ;;  %v959_v57 = vpop.f32.mrf.mxu1 }
 0x253   : > { %v960_v60 = vadd.f32 %v959_v57, %v945_v56 }
 0x255   : > { %v965_v63 = vmul.f32 5.086263e-06, %v960_v60 }
 0x257   : > { %v917_v44 = vpop.f32.mrf.mxu2  ;;  %v931_v45 = vpop.f32.mrf.mxu3  ;;  %v969_v14 = vadd.f32 %v965_v63, %v2278_v0 }
 0x258   : > { %v932_v46 = vadd.f32 %v931_v45, %v917_v44 }
 0x25a   : > { %v964_v47 = vmul.f32 5.086263e-06, %v932_v46  ;;  %v947_v1 = vpop.f32.mrf.mxu0 }
 0x25c   : > { %v968_v9 = vadd.f32 %v964_v47, %v2272_v42  ;;  %v961_v42 = vpop.f32.mrf.mxu1 }
 0x25d   : > { %v962_v15 = vadd.f32 %v961_v42, %v947_v1 }
 0x25f   : > { %v919_v48 = vpop.f32.mrf.mxu2  ;;  %v933_v10 = vpop.f32.mrf.mxu3  ;;  %v967_v26 = vmul.f32 5.086263e-06, %v962_v15 }
 0x260   : > { %v934_v37 = vadd.f32 %v933_v10, %v919_v48 }
 0x261   : > { %v971_v25 = vadd.f32 %v967_v26, %v673_v23 }
 0x262   : > { %v966_v49 = vmul.f32 5.086263e-06, %v934_v37 }
 0x264   : > { %v970_v50 = vadd.f32 %v966_v49, %v2280_v52 }
 0x267   : > { %v992_v51 = vpop.f32.mrf.mxu2  ;;  %v1006_v53 = vpop.f32.mrf.mxu3 }
 0x26f   : > { %v994_v34 = vpop.f32.mrf.mxu2  ;;  %v1008_v54 = vpop.f32.mrf.mxu3 }
 0x270   : > { %v1011_v40 = vpack.c.bf16 %v994_v34, %v992_v51  ;;  %v1012_v55 = vpack.c.bf16 %v1008_v54, %v1006_v53 }
 0x272   : > { %1214 = vmatmul.bf16.vlgmr.msrb.gmra.mxu0 %v1011_v40  ;;  %1228 = vmatmul.bf16.vlgmr.msrb.gmra.mxu1 %v1012_v55 }
 0x273   : > { %1242 = vmatmul.bf16.vlgmr.msrb.gmra.mxu2 %v1011_v40  ;;  %1256 = vmatmul.bf16.vlgmr.msrb.gmra.mxu3 %v1012_v55 }
 0x2ef   : > { %v1215_v2 = vpop.f32.mrf.mxu0  ;;  %v1229_v58 = vpop.f32.mrf.mxu1 }
 0x2f0   : > { %v1230_v59 = vadd.f32 %v1229_v58, %v1215_v2 }
 0x2f2   : > { %v1262_v61 = vmul.f32 3.973643e-08, %v1230_v59 }
 0x2f4   : > { %v1266_v52 = vadd.f32 %v1262_v61, %v968_v9  }
 0x2f6   : > { %v1243_v4 = vpop.f32.mrf.mxu2  ;;  %v1257_v5 = vpop.f32.mrf.mxu3  ;;  %v2314_v0 = vmov %v1266_v52  ;;  %1270 = vst [vmem:[#allocation8] sm:$0xff] (%p69_p0), %v1266_v52 }
 0x2f7   : > { %v1258_v7 = vadd.f32 %v1257_v5, %v1243_v4  ;;  %v1217_v8 = vpop.f32.mrf.mxu0  ;;  %v1231_v11 = vpop.f32.mrf.mxu1 }
 0x2f8   : > { %v1232_v12 = vadd.f32 %v1231_v11, %v1217_v8 }
 0x2f9   : > { %v1263_v16 = vmul.f32 3.973643e-08, %v1258_v7 }
 0x2fa   : > { %v1264_v17 = vmul.f32 3.973643e-08, %v1232_v12 }
 0x2fb   : > { %v1267_v19 = vadd.f32 %v1263_v16, %v969_v14  }
 0x2fc   : > { %v1268_v20 = vadd.f32 %v1264_v17, %v970_v50  }
 0x2fd   : > { %v2313_v1 = vmov %v1267_v19  ;;  %1271 = vst [vmem:[#allocation8 + $0x8] sm:$0xff] (%p69_p0), %v1267_v19 }
 0x2fe   : > { %v1245_v27 = vpop.f32.mrf.mxu2  ;;  %v1259_v22 = vpop.f32.mrf.mxu3  ;;  %v2312_v2 = vmov %v1268_v20  ;;  %1272 = vst [vmem:[#allocation8 + $0x10] sm:$0xff] (%p69_p0), %v1268_v20 }
 0x2ff   : > { %v1260_v24 = vadd.f32 %v1259_v22, %v1245_v27 }
 0x301   : > { %v1265_v28 = vmul.f32 3.973643e-08, %v1260_v24  ;;  %71 = sbr.rel (!%p69_p0) target bundleno = 17 (0x11), region = 57 }
 0x303   : > { %v1269_v29 = vadd.f32 %v1265_v28, %v971_v25  }
 0x305   : > { %v2311_v3 = vmov %v1269_v29  ;;  %1273 = vst [vmem:[#allocation8 + $0x18] sm:$0xff] (%p69_p0), %v1269_v29 }
 0x306   :  { %1286 = dma.vmem_to_hbm [thread:$0]  %s1279_s8, 512, %s1281_s6, [#allocation4], %s2178_s30, %s2178_s30, %s2179_s0  }
 0x307   :  { %2149 = dma.done.wait [#allocation4], 512  }
 0x308   :  { %2150 = vsyncadd [#allocation4], 4294966784 }
 0x309   :  { %1291 = vsyncpa [#allocation3], 1 }
 0x30a   :  { %1292 = vsyncpa [#allocation6], 1 }
 0x30b   :  { %1293 = vsyncpa [#allocation4], 1 }

</bundles_post_ra>
